<compile_context>
chip_gen: v6e
topology: v6e:2x2x1
jax: 0.10.0
libtpu: 0.0.40
codegen_flags: <defaults>
</compile_context>

<pallas_src>
import math
from functools import partial

import jax
import jax.numpy as jnp
from jax.experimental import pallas as pl
from jax.experimental.pallas import tpu as pltpu


def _attention_kernel(x_ref, mask_ref, wq_ref, wk_ref, wv_ref, wo_ref,
                      cq_ref, sq_ref, ck_ref, sk_ref, o_ref, acc_ref,
                      *, num_heads, head_dim, channels):
    f32, bf16 = jnp.float32, jnp.bfloat16

    x = x_ref[0]                                          # (T, C) bf16

    # Additive mask bias, computed once per batch step from the int8 mask.
    # Adding -1e4 is numerically identical to masked_fill(-1e4) after softmax
    # except for fully-masked rows (degenerate either way, no NaN risk).
    neg = mask_ref[0, 0].astype(jnp.int32) == 0           # (T, T) bool
    bias = jnp.where(neg, -10000.0, 0.0).astype(f32)      # (T, T) f32

    # Q/K/V projections (bf16 MXU operands, f32 accumulation).  Wq/Wk columns
    # were permuted in the wrapper to the global [even | odd] feature layout,
    # so the rotary rotation below is pure element-wise math on halves.
    q = jnp.dot(x, wq_ref[...], preferred_element_type=f32)          # (T, C)
    k = jnp.dot(x, wk_ref[...], preferred_element_type=f32)          # (T, C)
    v = jnp.dot(x, wv_ref[...], preferred_element_type=f32).astype(bf16)

    # Rotary + xpos (xpos scales and the 1/sqrt(C) score scale are folded into
    # the bf16 tables; math in f32 — v5e has no bf16 VPU).
    c2 = channels // 2
    qe, qo = q[:, :c2], q[:, c2:]
    ke, ko = k[:, :c2], k[:, c2:]
    cq = cq_ref[...].astype(f32)
    sq = sq_ref[...].astype(f32)
    ck = ck_ref[...].astype(f32)
    sk = sk_ref[...].astype(f32)
    qre = qe * cq - qo * sq                               # (T, C/2)
    qro = qo * cq + qe * sq
    kre = ke * ck - ko * sk
    kro = ko * ck + ke * sk

    # Assemble head-contiguous [even_h | odd_h] slabs so each head's score is
    # a single head_dim-wide contraction, then transpose K ONCE so the
    # per-head dots below are plain matmuls (no per-head XLU transposes).
    hd2 = head_dim // 2
    q_parts, k_parts = [], []
    for h in range(num_heads):
        s0, s1 = h * hd2, (h + 1) * hd2
        q_parts += [qre[:, s0:s1], qro[:, s0:s1]]
        k_parts += [kre[:, s0:s1], kro[:, s0:s1]]
    q_cat = jnp.concatenate(q_parts, axis=-1).astype(bf16)       # (T, C)
    k_t = jnp.concatenate(k_parts, axis=-1).T.astype(bf16)       # (C, T)

    # Static unroll over heads (all slicing static); group per-head outputs so
    # stores into the slab are >= 128 lanes wide whenever possible.
    heads_per_store = max(1, 128 // head_dim)
    group, group_start = [], 0
    for h in range(num_heads):
        lo, hi = h * head_dim, (h + 1) * head_dim

        # One head_dim-wide MXU contraction per head; scale already folded in.
        s = jnp.dot(q_cat[:, lo:hi], k_t[lo:hi, :],
                    preferred_element_type=f32)                   # (T, T)
        s = s + bias

        # Softmax with deferred normalisation (EUP approximate reciprocal).
        s = s - jnp.max(s, axis=-1, keepdims=True)
        p = jnp.exp(s)
        denom = jnp.sum(p, axis=-1, keepdims=True)                # (T, 1)
        oh = jnp.dot(p.astype(bf16), v[:, lo:hi],
                     preferred_element_type=f32)                  # (T, Dh)
        oh = oh * pl.reciprocal(denom, approx=True)
        # TODO(synk): attention dropout omitted (inference path: dropout_p -> 0).

        group.append(oh.astype(bf16))
        if len(group) == heads_per_store or h == num_heads - 1:
            start = group_start * head_dim
            stripe = group[0] if len(group) == 1 else jnp.concatenate(group, axis=-1)
            acc_ref[:, start:start + stripe.shape[-1]] = stripe
            group, group_start = [], h + 1

    # Output projection from the lane-dense (T, C) bf16 scratch slab.
    o_ref[0] = jnp.dot(acc_ref[...], wo_ref[...],
                       preferred_element_type=f32).astype(o_ref.dtype)


def _rotary_tables(seq_len, head_dim, num_heads, channels,
                   theta=10000.0, scale_base=512.0):
    """Half-width rotary/xpos tables, (T, C/2), with the score scale folded in."""
    dims = jnp.arange(0, head_dim, 2, dtype=jnp.float32)            # (Dh/2,)
    inv_freq = 1.0 / (theta ** (dims / head_dim))
    t = jnp.arange(seq_len, dtype=jnp.float32)
    freqs = t[:, None] * inv_freq[None, :]                          # (T, Dh/2)
    cos, sin = jnp.cos(freqs), jnp.sin(freqs)

    xpos = (dims + 0.4 * head_dim) / (1.4 * head_dim)               # (Dh/2,)
    power = (t - seq_len // 2) / scale_base
    scale = xpos[None, :] ** power[:, None]                         # (T, Dh/2)

    inv_sqrt_c = 1.0 / math.sqrt(channels)
    tile = lambda a: jnp.tile(a, (1, num_heads))                    # (T, C/2)
    cq = tile(cos * scale) * inv_sqrt_c      # queries: xpos scale + 1/sqrt(C)
    sq = tile(sin * scale) * inv_sqrt_c
    ck = tile(cos / scale)                   # keys: xpos scale ** -1
    sk = tile(sin / scale)
    return cq, sq, ck, sk


def _vmem_limit_bytes(t, c):
    """Explicit scoped-VMEM budget (with headroom), capped by chip capacity."""
    f32, bf16, i8 = 4, 2, 1
    est = 0
    est += 2 * t * c * bf16                 # x block (double-buffered)
    est += 2 * t * t * i8                   # int8 mask block
    est += 2 * 4 * c * c * bf16             # 4 weight matrices
    est += 2 * 4 * t * (c // 2) * bf16      # 4 rotary tables
    est += 2 * t * c * f32                  # f32 output block
    est += t * c * bf16                     # per-head output slab (scratch)
    est += 10 * t * c * f32                 # q/k/v/rot/assembled temporaries
    est += 4 * t * t * f32                  # score / prob / bias tiles
    est = int(est * 1.25) + (2 << 20)
    try:
        cap = int(pltpu.get_tpu_info().vmem_capacity_bytes * 0.9)
    except Exception:
        cap = 64 << 20
    return max(32 << 20, min(est, cap))


def attention_layer(x, attn_mask, wq, wk, wv, wo, num_heads):
    b, t, c = x.shape
    assert c % num_heads == 0
    head_dim = c // num_heads
    assert head_dim % 2 == 0

    cq, sq, ck, sk = _rotary_tables(t, head_dim, num_heads, c)
    tables = [a.astype(jnp.bfloat16) for a in (cq, sq, ck, sk)]

    # Fold a global even/odd feature permutation into the Q/K projection
    # weights (scores are invariant to a common permutation of q and k
    # features); cast all MXU operands to bf16.
    perm = jnp.concatenate([jnp.arange(0, c, 2), jnp.arange(1, c, 2)])
    wq_t = wq.T[:, perm].astype(jnp.bfloat16)
    wk_t = wk.T[:, perm].astype(jnp.bfloat16)
    wv_t = wv.T.astype(jnp.bfloat16)
    wo_t = wo.T.astype(jnp.bfloat16)
    x_bf = x.astype(jnp.bfloat16)
    mask_i8 = (attn_mask != 0).astype(jnp.int8)     # exact 0/1 semantics, 4x less DMA

    kernel = partial(_attention_kernel, num_heads=num_heads,
                     head_dim=head_dim, channels=c)

    def full2d(shape):
        return pl.BlockSpec(shape, lambda i: (0, 0))

    grid_spec = pltpu.PrefetchScalarGridSpec(
        num_scalar_prefetch=0,
        grid=(b,),
        in_specs=[
            pl.BlockSpec((1, t, c), lambda i: (i, 0, 0)),          # x (bf16)
            pl.BlockSpec((1, 1, t, t), lambda i: (i, 0, 0, 0)),    # mask (int8)
            full2d((c, c)),        # wq^T (even/odd-permuted columns, bf16)
            full2d((c, c)),        # wk^T (even/odd-permuted columns, bf16)
            full2d((c, c)),        # wv^T (bf16)
            full2d((c, c)),        # wo^T (bf16)
            full2d((t, c // 2)),   # cos * xpos_scale * 1/sqrt(C)  (queries, bf16)
            full2d((t, c // 2)),   # sin * xpos_scale * 1/sqrt(C)  (queries, bf16)
            full2d((t, c // 2)),   # cos / xpos_scale              (keys, bf16)
            full2d((t, c // 2)),   # sin / xpos_scale              (keys, bf16)
        ],
        out_specs=pl.BlockSpec((1, t, c), lambda i: (i, 0, 0)),
        scratch_shapes=[pltpu.VMEM((t, c), jnp.bfloat16)],         # head slab
    )

    return pl.pallas_call(
        kernel,
        out_shape=jax.ShapeDtypeStruct((b, t, c), jnp.float32),
        grid_spec=grid_spec,
        compiler_params=pltpu.CompilerParams(
            dimension_semantics=("parallel",),
            vmem_limit_bytes=_vmem_limit_bytes(t, c)),
    )(x_bf, mask_i8, wq_t, wk_t, wv_t, wo_t, *tables)


def _reference(x, attn_mask, wq, wk, wv, wo, num_heads):
    """Pure-JAX f32 mirror of the PyTorch module (interleaved rotary)."""
    b, t, c = x.shape
    hd = c // num_heads

    def proj(w):
        return (x @ w.T).reshape(b, t, num_heads, hd).transpose(0, 2, 1, 3)

    q, k, v = proj(wq), proj(wk), proj(wv)

    dims = jnp.arange(0, hd, 2, dtype=jnp.float32)
    inv_freq = 1.0 / (10000.0 ** (dims / hd))
    pos = jnp.arange(t, dtype=jnp.float32)
    freqs = jnp.repeat(pos[:, None] * inv_freq[None, :], 2, axis=-1)   # (T, Dh)
    cos, sin = jnp.cos(freqs), jnp.sin(freqs)
    xpos = (dims + 0.4 * hd) / (1.4 * hd)
    power = (pos - t // 2) / 512.0
    scale = jnp.repeat(xpos[None, :] ** power[:, None], 2, axis=-1)    # (T, Dh)

    def rot_half(u):
        u2 = u.reshape(u.shape[:-1] + (hd // 2, 2))
        r = jnp.stack([-u2[..., 1], u2[..., 0]], axis=-1)
        return r.reshape(u.shape)

    q = (q * cos + rot_half(q) * sin) * scale
    k = (k * cos + rot_half(k) * sin) / scale

    s = jnp.einsum('bhtd,bhsd->bhts', q, k) / math.sqrt(c)
    s = jnp.where(attn_mask == 0, -10000.0, s)
    p = jax.nn.softmax(s, axis=-1)
    o = jnp.einsum('bhts,bhsd->bhtd', p, v)
    o = o.transpose(0, 2, 1, 3).reshape(b, t, c)
    return o @ wo.T


if __name__ == "__main__":
    B, T, C, H = 2, 16, 32, 4   # batch, seq, channels, heads (head_dim = 8)
    key = jax.random.PRNGKey(0)
    kx, kq, kk, kv, ko = jax.random.split(key, 5)

    x = jax.random.normal(kx, (B, T, C), dtype=jnp.float32)

    # nn.Linear(channels, channels, bias=False) weights, deterministic init
    bound = 1.0 / math.sqrt(C)
    init = lambda k: jax.random.uniform(k, (C, C), jnp.float32, -bound, bound)
    wq, wk, wv, wo = init(kq), init(kk), init(kv), init(ko)

    # Causal attention mask (B, 1, T, T); nonzero = attend, 0 = masked.
    attn_mask = jnp.broadcast_to(
        jnp.tril(jnp.ones((T, T), jnp.float32)), (B, 1, T, T))

    out = attention_layer(x, attn_mask, wq, wk, wv, wo, num_heads=H)
    out = jax.block_until_ready(out)
    assert out.shape == (B, T, C) and out.dtype == jnp.float32

    # Tolerance check against a pure-JAX f32 reference (kernel uses bf16 MXU
    # operands/tables + approximate reciprocal, hence the loose tolerance).
    ref = _reference(x, attn_mask, wq, wk, wv, wo, H)
    assert jnp.allclose(out, ref, rtol=5e-2, atol=5e-2), \
        float(jnp.max(jnp.abs(out - ref)))

    print("KERNEL_OK")
</pallas_src>

<mosaic_0001>
module attributes {stable_mosaic.version = 11 : i64} {
  func.func @_attention_kernel(%arg0: i32, %arg1: memref<1x16x32xbf16, #tpu.memory_space<vmem>>, %arg2: memref<1x1x16x16xi8, #tpu.memory_space<vmem>>, %arg3: memref<32x32xbf16, #tpu.memory_space<vmem>>, %arg4: memref<32x32xbf16, #tpu.memory_space<vmem>>, %arg5: memref<32x32xbf16, #tpu.memory_space<vmem>>, %arg6: memref<32x32xbf16, #tpu.memory_space<vmem>>, %arg7: memref<16x16xbf16, #tpu.memory_space<vmem>>, %arg8: memref<16x16xbf16, #tpu.memory_space<vmem>>, %arg9: memref<16x16xbf16, #tpu.memory_space<vmem>>, %arg10: memref<16x16xbf16, #tpu.memory_space<vmem>>, %arg11: memref<1x16x32xf32, #tpu.memory_space<vmem>>, %arg12: memref<16x32xbf16, #tpu.memory_space<vmem>>) attributes {dimension_semantics = [#tpu.dimension_semantics<parallel>], iteration_bounds = array<i64: 2>, scalar_prefetch = 0 : i64, scratch_operands = 1 : i64, tpu.core_type = #tpu.core_type<tc>, window_params = [{transform_indices = @transform_0, window_bounds = array<i64: 1, 16, 32>}, {transform_indices = @transform_1, window_bounds = array<i64: 1, 1, 16, 16>}, {pipeline_mode = #tpu.pipeline_mode<synchronous>, transform_indices = @transform_2, window_bounds = array<i64: 32, 32>}, {pipeline_mode = #tpu.pipeline_mode<synchronous>, transform_indices = @transform_3, window_bounds = array<i64: 32, 32>}, {pipeline_mode = #tpu.pipeline_mode<synchronous>, transform_indices = @transform_4, window_bounds = array<i64: 32, 32>}, {pipeline_mode = #tpu.pipeline_mode<synchronous>, transform_indices = @transform_5, window_bounds = array<i64: 32, 32>}, {pipeline_mode = #tpu.pipeline_mode<synchronous>, transform_indices = @transform_6, window_bounds = array<i64: 16, 16>}, {pipeline_mode = #tpu.pipeline_mode<synchronous>, transform_indices = @transform_7, window_bounds = array<i64: 16, 16>}, {pipeline_mode = #tpu.pipeline_mode<synchronous>, transform_indices = @transform_8, window_bounds = array<i64: 16, 16>}, {pipeline_mode = #tpu.pipeline_mode<synchronous>, transform_indices = @transform_9, window_bounds = array<i64: 16, 16>}, {transform_indices = @transform_10, window_bounds = array<i64: 1, 16, 32>}]} {
    %c0 = arith.constant 0 : index
    %c0_0 = arith.constant 0 : index
    %c0_1 = arith.constant 0 : index
    %0 = vector.load %arg1[%c0, %c0_0, %c0_1] : memref<1x16x32xbf16, #tpu.memory_space<vmem>>, vector<1x16x32xbf16>
    %1 = vector.shape_cast %0 : vector<1x16x32xbf16> to vector<16x32xbf16>
    %c0_2 = arith.constant 0 : index
    %c0_3 = arith.constant 0 : index
    %c0_4 = arith.constant 0 : index
    %c0_5 = arith.constant 0 : index
    %2 = vector.load %arg2[%c0_2, %c0_3, %c0_4, %c0_5] : memref<1x1x16x16xi8, #tpu.memory_space<vmem>>, vector<1x1x16x16xi8>
    %3 = vector.shape_cast %2 : vector<1x1x16x16xi8> to vector<16x16xi8>
    %4 = arith.extsi %3 : vector<16x16xi8> to vector<16x16xi32>
    %c0_i32 = arith.constant 0 : i32
    %5 = vector.broadcast %c0_i32 : i32 to vector<16x16xi32>
    %6 = arith.cmpi eq, %4, %5 : vector<16x16xi32>
    %cst = arith.constant -1.000000e+04 : f32
    %cst_6 = arith.constant 0.000000e+00 : f32
    %7 = vector.broadcast %cst : f32 to vector<16x16xf32>
    %8 = vector.broadcast %cst_6 : f32 to vector<16x16xf32>
    %9 = arith.select %6, %7, %8 : vector<16x16xi1>, vector<16x16xf32>
    %c0_7 = arith.constant 0 : index
    %c0_8 = arith.constant 0 : index
    %10 = vector.load %arg3[%c0_7, %c0_8] : memref<32x32xbf16, #tpu.memory_space<vmem>>, vector<32x32xbf16>
    %cst_9 = arith.constant dense<0.000000e+00> : vector<16x32xf32>
    %11 = tpu.matmul %1, %10, %cst_9 {dimension_numbers = #tpu.dot_dimension_numbers<[1], [0], [0], [1], [0, 0, 1, 1], [], []>} : vector<16x32xbf16>, vector<32x32xbf16>, vector<16x32xf32> -> vector<16x32xf32>
    %c0_10 = arith.constant 0 : index
    %c0_11 = arith.constant 0 : index
    %12 = vector.load %arg4[%c0_10, %c0_11] : memref<32x32xbf16, #tpu.memory_space<vmem>>, vector<32x32xbf16>
    %cst_12 = arith.constant dense<0.000000e+00> : vector<16x32xf32>
    %13 = tpu.matmul %1, %12, %cst_12 {dimension_numbers = #tpu.dot_dimension_numbers<[1], [0], [0], [1], [0, 0, 1, 1], [], []>} : vector<16x32xbf16>, vector<32x32xbf16>, vector<16x32xf32> -> vector<16x32xf32>
    %c0_13 = arith.constant 0 : index
    %c0_14 = arith.constant 0 : index
    %14 = vector.load %arg5[%c0_13, %c0_14] : memref<32x32xbf16, #tpu.memory_space<vmem>>, vector<32x32xbf16>
    %cst_15 = arith.constant dense<0.000000e+00> : vector<16x32xf32>
    %15 = tpu.matmul %1, %14, %cst_15 {dimension_numbers = #tpu.dot_dimension_numbers<[1], [0], [0], [1], [0, 0, 1, 1], [], []>} : vector<16x32xbf16>, vector<32x32xbf16>, vector<16x32xf32> -> vector<16x32xf32>
    %16 = arith.truncf %15 : vector<16x32xf32> to vector<16x32xbf16>
    %17 = vector.extract_strided_slice %11 {offsets = [0, 0], sizes = [16, 16], strides = [1, 1]} : vector<16x32xf32> to vector<16x16xf32>
    %18 = vector.extract_strided_slice %11 {offsets = [0, 16], sizes = [16, 16], strides = [1, 1]} : vector<16x32xf32> to vector<16x16xf32>
    %19 = vector.extract_strided_slice %13 {offsets = [0, 0], sizes = [16, 16], strides = [1, 1]} : vector<16x32xf32> to vector<16x16xf32>
    %20 = vector.extract_strided_slice %13 {offsets = [0, 16], sizes = [16, 16], strides = [1, 1]} : vector<16x32xf32> to vector<16x16xf32>
    %c0_16 = arith.constant 0 : index
    %c0_17 = arith.constant 0 : index
    %21 = vector.load %arg7[%c0_16, %c0_17] : memref<16x16xbf16, #tpu.memory_space<vmem>>, vector<16x16xbf16>
    %22 = arith.extf %21 : vector<16x16xbf16> to vector<16x16xf32>
    %c0_18 = arith.constant 0 : index
    %c0_19 = arith.constant 0 : index
    %23 = vector.load %arg8[%c0_18, %c0_19] : memref<16x16xbf16, #tpu.memory_space<vmem>>, vector<16x16xbf16>
    %24 = arith.extf %23 : vector<16x16xbf16> to vector<16x16xf32>
    %c0_20 = arith.constant 0 : index
    %c0_21 = arith.constant 0 : index
    %25 = vector.load %arg9[%c0_20, %c0_21] : memref<16x16xbf16, #tpu.memory_space<vmem>>, vector<16x16xbf16>
    %26 = arith.extf %25 : vector<16x16xbf16> to vector<16x16xf32>
    %c0_22 = arith.constant 0 : index
    %c0_23 = arith.constant 0 : index
    %27 = vector.load %arg10[%c0_22, %c0_23] : memref<16x16xbf16, #tpu.memory_space<vmem>>, vector<16x16xbf16>
    %28 = arith.extf %27 : vector<16x16xbf16> to vector<16x16xf32>
    %29 = arith.mulf %17, %22 : vector<16x16xf32>
    %30 = arith.mulf %18, %24 : vector<16x16xf32>
    %31 = arith.subf %29, %30 : vector<16x16xf32>
    %32 = arith.mulf %18, %22 : vector<16x16xf32>
    %33 = arith.mulf %17, %24 : vector<16x16xf32>
    %34 = arith.addf %32, %33 : vector<16x16xf32>
    %35 = arith.mulf %19, %26 : vector<16x16xf32>
    %36 = arith.mulf %20, %28 : vector<16x16xf32>
    %37 = arith.subf %35, %36 : vector<16x16xf32>
    %38 = arith.mulf %20, %26 : vector<16x16xf32>
    %39 = arith.mulf %19, %28 : vector<16x16xf32>
    %40 = arith.addf %38, %39 : vector<16x16xf32>
    %41 = vector.extract_strided_slice %31 {offsets = [0, 0], sizes = [16, 4], strides = [1, 1]} : vector<16x16xf32> to vector<16x4xf32>
    %42 = vector.extract_strided_slice %34 {offsets = [0, 0], sizes = [16, 4], strides = [1, 1]} : vector<16x16xf32> to vector<16x4xf32>
    %43 = vector.extract_strided_slice %37 {offsets = [0, 0], sizes = [16, 4], strides = [1, 1]} : vector<16x16xf32> to vector<16x4xf32>
    %44 = vector.extract_strided_slice %40 {offsets = [0, 0], sizes = [16, 4], strides = [1, 1]} : vector<16x16xf32> to vector<16x4xf32>
    %45 = vector.extract_strided_slice %31 {offsets = [0, 4], sizes = [16, 4], strides = [1, 1]} : vector<16x16xf32> to vector<16x4xf32>
    %46 = vector.extract_strided_slice %34 {offsets = [0, 4], sizes = [16, 4], strides = [1, 1]} : vector<16x16xf32> to vector<16x4xf32>
    %47 = vector.extract_strided_slice %37 {offsets = [0, 4], sizes = [16, 4], strides = [1, 1]} : vector<16x16xf32> to vector<16x4xf32>
    %48 = vector.extract_strided_slice %40 {offsets = [0, 4], sizes = [16, 4], strides = [1, 1]} : vector<16x16xf32> to vector<16x4xf32>
    %49 = vector.extract_strided_slice %31 {offsets = [0, 8], sizes = [16, 4], strides = [1, 1]} : vector<16x16xf32> to vector<16x4xf32>
    %50 = vector.extract_strided_slice %34 {offsets = [0, 8], sizes = [16, 4], strides = [1, 1]} : vector<16x16xf32> to vector<16x4xf32>
    %51 = vector.extract_strided_slice %37 {offsets = [0, 8], sizes = [16, 4], strides = [1, 1]} : vector<16x16xf32> to vector<16x4xf32>
    %52 = vector.extract_strided_slice %40 {offsets = [0, 8], sizes = [16, 4], strides = [1, 1]} : vector<16x16xf32> to vector<16x4xf32>
    %53 = vector.extract_strided_slice %31 {offsets = [0, 12], sizes = [16, 4], strides = [1, 1]} : vector<16x16xf32> to vector<16x4xf32>
    %54 = vector.extract_strided_slice %34 {offsets = [0, 12], sizes = [16, 4], strides = [1, 1]} : vector<16x16xf32> to vector<16x4xf32>
    %55 = vector.extract_strided_slice %37 {offsets = [0, 12], sizes = [16, 4], strides = [1, 1]} : vector<16x16xf32> to vector<16x4xf32>
    %56 = vector.extract_strided_slice %40 {offsets = [0, 12], sizes = [16, 4], strides = [1, 1]} : vector<16x16xf32> to vector<16x4xf32>
    %57 = tpu.concatenate %41, %42, %45, %46, %49, %50, %53, %54 in 1 : vector<16x4xf32>, vector<16x4xf32>, vector<16x4xf32>, vector<16x4xf32>, vector<16x4xf32>, vector<16x4xf32>, vector<16x4xf32>, vector<16x4xf32> -> vector<16x32xf32>
    %58 = arith.truncf %57 : vector<16x32xf32> to vector<16x32xbf16>
    %59 = tpu.concatenate %43, %44, %47, %48, %51, %52, %55, %56 in 1 : vector<16x4xf32>, vector<16x4xf32>, vector<16x4xf32>, vector<16x4xf32>, vector<16x4xf32>, vector<16x4xf32>, vector<16x4xf32>, vector<16x4xf32> -> vector<16x32xf32>
    %60 = tpu.transpose %59, [1, 0] : vector<16x32xf32> -> vector<32x16xf32>
    %61 = arith.truncf %60 : vector<32x16xf32> to vector<32x16xbf16>
    %62 = vector.extract_strided_slice %58 {offsets = [0, 0], sizes = [16, 8], strides = [1, 1]} : vector<16x32xbf16> to vector<16x8xbf16>
    %63 = vector.extract_strided_slice %61 {offsets = [0, 0], sizes = [8, 16], strides = [1, 1]} : vector<32x16xbf16> to vector<8x16xbf16>
    %cst_24 = arith.constant dense<0.000000e+00> : vector<16x16xf32>
    %64 = tpu.matmul %62, %63, %cst_24 {dimension_numbers = #tpu.dot_dimension_numbers<[1], [0], [0], [1], [0, 0, 1, 1], [], []>} : vector<16x8xbf16>, vector<8x16xbf16>, vector<16x16xf32> -> vector<16x16xf32>
    %65 = arith.addf %64, %9 : vector<16x16xf32>
    %cst_25 = arith.constant dense<0xFF800000> : vector<16xf32>
    %66 = vector.multi_reduction <maximumf>, %65, %cst_25 [1] : vector<16x16xf32> to vector<16xf32>
    %67 = vector.shape_cast %66 : vector<16xf32> to vector<16x1xf32>
    %68 = vector.broadcast %67 : vector<16x1xf32> to vector<16x16xf32>
    %69 = arith.subf %65, %68 : vector<16x16xf32>
    %70 = math.exp %69 : vector<16x16xf32>
    %cst_26 = arith.constant dense<0.000000e+00> : vector<16xf32>
    %71 = vector.multi_reduction <add>, %70, %cst_26 [1] : vector<16x16xf32> to vector<16xf32>
    %72 = vector.shape_cast %71 : vector<16xf32> to vector<16x1xf32>
    %73 = arith.truncf %70 : vector<16x16xf32> to vector<16x16xbf16>
    %74 = vector.extract_strided_slice %16 {offsets = [0, 0], sizes = [16, 8], strides = [1, 1]} : vector<16x32xbf16> to vector<16x8xbf16>
    %cst_27 = arith.constant dense<0.000000e+00> : vector<16x8xf32>
    %75 = tpu.matmul %73, %74, %cst_27 {dimension_numbers = #tpu.dot_dimension_numbers<[1], [0], [0], [1], [0, 0, 1, 1], [], []>} : vector<16x16xbf16>, vector<16x8xbf16>, vector<16x8xf32> -> vector<16x8xf32>
    %76 = tpu.reciprocal %72 {approx = true} : vector<16x1xf32> -> vector<16x1xf32>
    %77 = vector.broadcast %76 : vector<16x1xf32> to vector<16x8xf32>
    %78 = arith.mulf %75, %77 : vector<16x8xf32>
    %79 = arith.truncf %78 : vector<16x8xf32> to vector<16x8xbf16>
    %80 = vector.extract_strided_slice %58 {offsets = [0, 8], sizes = [16, 8], strides = [1, 1]} : vector<16x32xbf16> to vector<16x8xbf16>
    %81 = vector.extract_strided_slice %61 {offsets = [8, 0], sizes = [8, 16], strides = [1, 1]} : vector<32x16xbf16> to vector<8x16xbf16>
    %cst_28 = arith.constant dense<0.000000e+00> : vector<16x16xf32>
    %82 = tpu.matmul %80, %81, %cst_28 {dimension_numbers = #tpu.dot_dimension_numbers<[1], [0], [0], [1], [0, 0, 1, 1], [], []>} : vector<16x8xbf16>, vector<8x16xbf16>, vector<16x16xf32> -> vector<16x16xf32>
    %83 = arith.addf %82, %9 : vector<16x16xf32>
    %cst_29 = arith.constant dense<0xFF800000> : vector<16xf32>
    %84 = vector.multi_reduction <maximumf>, %83, %cst_29 [1] : vector<16x16xf32> to vector<16xf32>
    %85 = vector.shape_cast %84 : vector<16xf32> to vector<16x1xf32>
    %86 = vector.broadcast %85 : vector<16x1xf32> to vector<16x16xf32>
    %87 = arith.subf %83, %86 : vector<16x16xf32>
    %88 = math.exp %87 : vector<16x16xf32>
    %cst_30 = arith.constant dense<0.000000e+00> : vector<16xf32>
    %89 = vector.multi_reduction <add>, %88, %cst_30 [1] : vector<16x16xf32> to vector<16xf32>
    %90 = vector.shape_cast %89 : vector<16xf32> to vector<16x1xf32>
    %91 = arith.truncf %88 : vector<16x16xf32> to vector<16x16xbf16>
    %92 = vector.extract_strided_slice %16 {offsets = [0, 8], sizes = [16, 8], strides = [1, 1]} : vector<16x32xbf16> to vector<16x8xbf16>
    %cst_31 = arith.constant dense<0.000000e+00> : vector<16x8xf32>
    %93 = tpu.matmul %91, %92, %cst_31 {dimension_numbers = #tpu.dot_dimension_numbers<[1], [0], [0], [1], [0, 0, 1, 1], [], []>} : vector<16x16xbf16>, vector<16x8xbf16>, vector<16x8xf32> -> vector<16x8xf32>
    %94 = tpu.reciprocal %90 {approx = true} : vector<16x1xf32> -> vector<16x1xf32>
    %95 = vector.broadcast %94 : vector<16x1xf32> to vector<16x8xf32>
    %96 = arith.mulf %93, %95 : vector<16x8xf32>
    %97 = arith.truncf %96 : vector<16x8xf32> to vector<16x8xbf16>
    %98 = vector.extract_strided_slice %58 {offsets = [0, 16], sizes = [16, 8], strides = [1, 1]} : vector<16x32xbf16> to vector<16x8xbf16>
    %99 = vector.extract_strided_slice %61 {offsets = [16, 0], sizes = [8, 16], strides = [1, 1]} : vector<32x16xbf16> to vector<8x16xbf16>
    %cst_32 = arith.constant dense<0.000000e+00> : vector<16x16xf32>
    %100 = tpu.matmul %98, %99, %cst_32 {dimension_numbers = #tpu.dot_dimension_numbers<[1], [0], [0], [1], [0, 0, 1, 1], [], []>} : vector<16x8xbf16>, vector<8x16xbf16>, vector<16x16xf32> -> vector<16x16xf32>
    %101 = arith.addf %100, %9 : vector<16x16xf32>
    %cst_33 = arith.constant dense<0xFF800000> : vector<16xf32>
    %102 = vector.multi_reduction <maximumf>, %101, %cst_33 [1] : vector<16x16xf32> to vector<16xf32>
    %103 = vector.shape_cast %102 : vector<16xf32> to vector<16x1xf32>
    %104 = vector.broadcast %103 : vector<16x1xf32> to vector<16x16xf32>
    %105 = arith.subf %101, %104 : vector<16x16xf32>
    %106 = math.exp %105 : vector<16x16xf32>
    %cst_34 = arith.constant dense<0.000000e+00> : vector<16xf32>
    %107 = vector.multi_reduction <add>, %106, %cst_34 [1] : vector<16x16xf32> to vector<16xf32>
    %108 = vector.shape_cast %107 : vector<16xf32> to vector<16x1xf32>
    %109 = arith.truncf %106 : vector<16x16xf32> to vector<16x16xbf16>
    %110 = vector.extract_strided_slice %16 {offsets = [0, 16], sizes = [16, 8], strides = [1, 1]} : vector<16x32xbf16> to vector<16x8xbf16>
    %cst_35 = arith.constant dense<0.000000e+00> : vector<16x8xf32>
    %111 = tpu.matmul %109, %110, %cst_35 {dimension_numbers = #tpu.dot_dimension_numbers<[1], [0], [0], [1], [0, 0, 1, 1], [], []>} : vector<16x16xbf16>, vector<16x8xbf16>, vector<16x8xf32> -> vector<16x8xf32>
    %112 = tpu.reciprocal %108 {approx = true} : vector<16x1xf32> -> vector<16x1xf32>
    %113 = vector.broadcast %112 : vector<16x1xf32> to vector<16x8xf32>
    %114 = arith.mulf %111, %113 : vector<16x8xf32>
    %115 = arith.truncf %114 : vector<16x8xf32> to vector<16x8xbf16>
    %116 = vector.extract_strided_slice %58 {offsets = [0, 24], sizes = [16, 8], strides = [1, 1]} : vector<16x32xbf16> to vector<16x8xbf16>
    %117 = vector.extract_strided_slice %61 {offsets = [24, 0], sizes = [8, 16], strides = [1, 1]} : vector<32x16xbf16> to vector<8x16xbf16>
    %cst_36 = arith.constant dense<0.000000e+00> : vector<16x16xf32>
    %118 = tpu.matmul %116, %117, %cst_36 {dimension_numbers = #tpu.dot_dimension_numbers<[1], [0], [0], [1], [0, 0, 1, 1], [], []>} : vector<16x8xbf16>, vector<8x16xbf16>, vector<16x16xf32> -> vector<16x16xf32>
    %119 = arith.addf %118, %9 : vector<16x16xf32>
    %cst_37 = arith.constant dense<0xFF800000> : vector<16xf32>
    %120 = vector.multi_reduction <maximumf>, %119, %cst_37 [1] : vector<16x16xf32> to vector<16xf32>
    %121 = vector.shape_cast %120 : vector<16xf32> to vector<16x1xf32>
    %122 = vector.broadcast %121 : vector<16x1xf32> to vector<16x16xf32>
    %123 = arith.subf %119, %122 : vector<16x16xf32>
    %124 = math.exp %123 : vector<16x16xf32>
    %cst_38 = arith.constant dense<0.000000e+00> : vector<16xf32>
    %125 = vector.multi_reduction <add>, %124, %cst_38 [1] : vector<16x16xf32> to vector<16xf32>
    %126 = vector.shape_cast %125 : vector<16xf32> to vector<16x1xf32>
    %127 = arith.truncf %124 : vector<16x16xf32> to vector<16x16xbf16>
    %128 = vector.extract_strided_slice %16 {offsets = [0, 24], sizes = [16, 8], strides = [1, 1]} : vector<16x32xbf16> to vector<16x8xbf16>
    %cst_39 = arith.constant dense<0.000000e+00> : vector<16x8xf32>
    %129 = tpu.matmul %127, %128, %cst_39 {dimension_numbers = #tpu.dot_dimension_numbers<[1], [0], [0], [1], [0, 0, 1, 1], [], []>} : vector<16x16xbf16>, vector<16x8xbf16>, vector<16x8xf32> -> vector<16x8xf32>
    %130 = tpu.reciprocal %126 {approx = true} : vector<16x1xf32> -> vector<16x1xf32>
    %131 = vector.broadcast %130 : vector<16x1xf32> to vector<16x8xf32>
    %132 = arith.mulf %129, %131 : vector<16x8xf32>
    %133 = arith.truncf %132 : vector<16x8xf32> to vector<16x8xbf16>
    %134 = tpu.concatenate %79, %97, %115, %133 in 1 : vector<16x8xbf16>, vector<16x8xbf16>, vector<16x8xbf16>, vector<16x8xbf16> -> vector<16x32xbf16>
    %c0_40 = arith.constant 0 : index
    %c0_41 = arith.constant 0 : index
    %135 = vector.load %arg12[%c0_40, %c0_41] : memref<16x32xbf16, #tpu.memory_space<vmem>>, vector<16x32xbf16>
    tpu.vector_store %arg12[%c0_40, %c0_41], %134 {strides = array<i32>} : memref<16x32xbf16, #tpu.memory_space<vmem>>, vector<16x32xbf16>,
    %c0_42 = arith.constant 0 : index
    %c0_43 = arith.constant 0 : index
    %136 = vector.load %arg12[%c0_42, %c0_43] : memref<16x32xbf16, #tpu.memory_space<vmem>>, vector<16x32xbf16>
    %c0_44 = arith.constant 0 : index
    %c0_45 = arith.constant 0 : index
    %137 = vector.load %arg6[%c0_44, %c0_45] : memref<32x32xbf16, #tpu.memory_space<vmem>>, vector<32x32xbf16>
    %cst_46 = arith.constant dense<0.000000e+00> : vector<16x32xf32>
    %138 = tpu.matmul %136, %137, %cst_46 {dimension_numbers = #tpu.dot_dimension_numbers<[1], [0], [0], [1], [0, 0, 1, 1], [], []>} : vector<16x32xbf16>, vector<32x32xbf16>, vector<16x32xf32> -> vector<16x32xf32>
    %c0_47 = arith.constant 0 : index
    %c0_48 = arith.constant 0 : index
    %c0_49 = arith.constant 0 : index
    %139 = vector.load %arg11[%c0_47, %c0_48, %c0_49] : memref<1x16x32xf32, #tpu.memory_space<vmem>>, vector<1x16x32xf32>
    %140 = vector.shape_cast %139 : vector<1x16x32xf32> to vector<16x32xf32>
    %141 = vector.shape_cast %138 : vector<16x32xf32> to vector<1x16x32xf32>
    tpu.vector_store %arg11[%c0_47, %c0_48, %c0_49], %141 {strides = array<i32>} : memref<1x16x32xf32, #tpu.memory_space<vmem>>, vector<1x16x32xf32>,
    return
  }
  func.func @transform_0(%arg0: i32) -> (i32, i32, i32) {
    %c0_i32 = arith.constant 0 : i32
    %c0_i32_0 = arith.constant 0 : i32
    %c0_i32_1 = arith.constant 0 : i32
    return %arg0, %c0_i32, %c0_i32_0 : i32, i32, i32
  }
  func.func @transform_1(%arg0: i32) -> (i32, i32, i32, i32) {
    %c0_i32 = arith.constant 0 : i32
    %c0_i32_0 = arith.constant 0 : i32
    %c0_i32_1 = arith.constant 0 : i32
    %c0_i32_2 = arith.constant 0 : i32
    return %arg0, %c0_i32, %c0_i32_0, %c0_i32_1 : i32, i32, i32, i32
  }
  func.func @transform_2(%arg0: i32) -> (i32, i32) {
    %c0_i32 = arith.constant 0 : i32
    %c0_i32_0 = arith.constant 0 : i32
    %c0_i32_1 = arith.constant 0 : i32
    return %c0_i32, %c0_i32_0 : i32, i32
  }
  func.func @transform_3(%arg0: i32) -> (i32, i32) {
    %c0_i32 = arith.constant 0 : i32
    %c0_i32_0 = arith.constant 0 : i32
    %c0_i32_1 = arith.constant 0 : i32
    return %c0_i32, %c0_i32_0 : i32, i32
  }
  func.func @transform_4(%arg0: i32) -> (i32, i32) {
    %c0_i32 = arith.constant 0 : i32
    %c0_i32_0 = arith.constant 0 : i32
    %c0_i32_1 = arith.constant 0 : i32
    return %c0_i32, %c0_i32_0 : i32, i32
  }
  func.func @transform_5(%arg0: i32) -> (i32, i32) {
    %c0_i32 = arith.constant 0 : i32
    %c0_i32_0 = arith.constant 0 : i32
    %c0_i32_1 = arith.constant 0 : i32
    return %c0_i32, %c0_i32_0 : i32, i32
  }
  func.func @transform_6(%arg0: i32) -> (i32, i32) {
    %c0_i32 = arith.constant 0 : i32
    %c0_i32_0 = arith.constant 0 : i32
    %c0_i32_1 = arith.constant 0 : i32
    return %c0_i32, %c0_i32_0 : i32, i32
  }
  func.func @transform_7(%arg0: i32) -> (i32, i32) {
    %c0_i32 = arith.constant 0 : i32
    %c0_i32_0 = arith.constant 0 : i32
    %c0_i32_1 = arith.constant 0 : i32
    return %c0_i32, %c0_i32_0 : i32, i32
  }
  func.func @transform_8(%arg0: i32) -> (i32, i32) {
    %c0_i32 = arith.constant 0 : i32
    %c0_i32_0 = arith.constant 0 : i32
    %c0_i32_1 = arith.constant 0 : i32
    return %c0_i32, %c0_i32_0 : i32, i32
  }
  func.func @transform_9(%arg0: i32) -> (i32, i32) {
    %c0_i32 = arith.constant 0 : i32
    %c0_i32_0 = arith.constant 0 : i32
    %c0_i32_1 = arith.constant 0 : i32
    return %c0_i32, %c0_i32_0 : i32, i32
  }
  func.func @transform_10(%arg0: i32) -> (i32, i32, i32) {
    %c0_i32 = arith.constant 0 : i32
    %c0_i32_0 = arith.constant 0 : i32
    %c0_i32_1 = arith.constant 0 : i32
    return %arg0, %c0_i32, %c0_i32_0 : i32, i32, i32
  }
}

</mosaic_0001>

<bundles_post_ra>
// kernel: tpu_custom_call.1
= control target key start
LH: loop header
LB: loop body
LE: loop exit
PB: predicated region body
PF: predicated region fallthrough
CT: control target
= control target key end

     0   :  { %s3023_s0 = inlined_call_operand.hbm [shape: bf16[2,16,32], index: 0, kind: input, shape index: {}]   ;;  %s3024_s1 = inlined_call_operand.hbm [shape: s8[2,1,16,16], index: 1, kind: input, shape index: {}]   ;;  %s3025_s2 = inlined_call_operand.hbm [shape: bf16[32,32], index: 2, kind: input, shape index: {}]   ;;  %s3026_s3 = inlined_call_operand.hbm [shape: bf16[32,32], index: 3, kind: input, shape index: {}]   ;;  %s3027_s4 = inlined_call_operand.hbm [shape: bf16[32,32], index: 4, kind: input, shape index: {}]   ;;  %s3028_s5 = inlined_call_operand.hbm [shape: bf16[32,32], index: 5, kind: input, shape index: {}]   ;;  %s3029_s6 = inlined_call_operand.vmem [shape: bf16[16,16], index: 6, kind: input, shape index: {}]   ;;  %s3030_s7 = inlined_call_operand.hbm [shape: bf16[16,16], index: 7, kind: input, shape index: {}]   ;;  %s3031_s8 = inlined_call_operand.hbm [shape: bf16[16,16], index: 8, kind: input, shape index: {}]   ;;  %s3032_s9 = inlined_call_operand.vmem [shape: bf16[16,16], index: 9, kind: input, shape index: {}]   ;;  %s3033_s10 = inlined_call_operand.hbm [shape: f32[2,16,32], index: 10, kind: output, shape index: {}]  }
   0x1   :  { %3039 = sst [smem:[#allocation26_spill]] %s3023_s0 }
   0x2   :  { %3040 = sst [smem:[#allocation27_spill]] %s3025_s2 }
   0x3   :  { %3041 = sst [smem:[#allocation28_spill]] %s3026_s3 }
   0x4   :  { %3042 = sst [smem:[#allocation29_spill]] %s3027_s4 }
   0x5   :  { %3043 = sst [smem:[#allocation30_spill]] %s3028_s5 }
   0x6   :  { %3044 = sst [smem:[#allocation31_spill]] %s3030_s7 }
   0x7   :  { %3045 = sst [smem:[#allocation32_spill]] %s3031_s8 }
   0x8   :  { %15 = vsyncpa [#allocation4], 0 }
   0x9   :  { %17 = vsyncpa [#allocation4 + $0x1], 0 }
   0xa   :  { %18 = vsyncpa [#allocation7], 0 }
   0xb   :  { %20 = vsyncpa [#allocation7 + $0x1], 0 }
   0xc   :  { %21 = vsyncpa [#allocation10], 0 }
   0xd   :  { %22 = vsyncpa [#allocation13], 0 }
   0xe   :  { %23 = vsyncpa [#allocation16], 0 }
   0xf   :  { %24 = vsyncpa [#allocation5], 0 }
  0x10   :  { %26 = vsyncpa [#allocation5 + $0x1], 0  ;;  %s2500_s13 = smov 0   ;;  %s2502_s14 = smov 0  }
  0x11   :  { %s2504_s15 = smov 0   ;;  %s2506_s16 = smov 0  }
  0x12 LB: > { %s2419_s17 = smov [#allocation8]   ;;  %s2521_s19 = sadd.s32 4294967295, %s2417_s16   ;;  %s2417_s16 = sphi %s2506_s16, %s3082_s16   ;;  %s2413_s15 = sphi %s2504_s15, %s3081_s15   ;;  %s2409_s14 = sphi %s2502_s14, %s3080_s14   ;;  %s2405_s13 = sphi %s2500_s13, %s3079_s13  }
  0x13   : > { %s295_s18 = sshll.u32 %s2419_s17, 4  ;;  %p1696_p0 = scmp.ge.s32.totalorder %s2417_s16, 1  ;;  %s296_s18 = int_to_ptr.vmem [resolvable:$true] %s295_s18 }
  0x14   : > { %p3036_p1 = scmp.eq.s32.totalorder %s2521_s19, 0  ;;  %p283_p2 = scmp.lt.s32.totalorder %s2417_s16, 3 }
  0x15   : > { %s2420_s21 = smov [#allocation9]   ;;  %s2421_s24 = smov [#allocation12]  }
  0x16   : > { %p2526_p3 = pnand %p1696_p0, %p283_p2  ;;  %s308_s22 = sshll.u32 %s2420_s21, 4  ;;  %s2539_s22 = int_to_ptr.vmem [resolvable:$true] %s308_s22 }
  0x17   : > { %s334_s25 = sshll.u32 %s2421_s24, 4  ;;  %s2132_s27 = scalar_lea.vmem %s296_s18, 256  ;;  %s2541_s25 = int_to_ptr.vmem [resolvable:$true] %s334_s25 }
  0x18   : > { %p1910_p5 = pneg %p2526_p3  ;;  %p2133_p8 = scmp.ne.s32.totalorder %s296_s18, %s2132_s27 }
  0x19   : > { %p2140_p11 = scmp.lt.s32.totalorder %s296_s18, %s296_s18  ;;  %p2141_p12 = scmp.lt.s32.totalorder %s2132_s27, %s2132_s27 }
  0x1a   : > { %p2535_p6 = pnand %p1910_p5, %p3036_p1 }
  0x1b   : > { %p2142_p13 = por %p2141_p12, %p2140_p11 }
  0x1c   : > { %p2545_p7 = pneg %p2535_p6 }
  0x1e   : > { %p2135_p9 = pnand %p2133_p8, %p2545_p7 }
  0x20   : > { %p2136_p10 = pneg %p2135_p9 }
  0x22   : > { %p2143_p0 = pnand %p2142_p13, %p2136_p10 }
  0x24   : > { %2146 = shalt.err (!%p2143_p0)
}
  0x25   : > { %s3034_s28 = smov 64   ;;  %s3035_s29 = smov 4  }
  0x26   : > { %s3049_s2 = sld [smem:[#allocation27_spill]]  ;;  %s2158_s12 = scalar_lea.vmem %s2539_s22, 256 }
  0x27   : > { %p2159_p2 = scmp.ne.s32.totalorder %s2539_s22, %s2158_s12  ;;  %p2166_p9 = scmp.lt.s32.totalorder %s2539_s22, %s2539_s22 }
  0x28   : > { %p2167_p10 = scmp.lt.s32.totalorder %s2158_s12, %s2158_s12 }
  0x29   : > { %p2161_p5 = pnand %p2159_p2, %p2545_p7 }
  0x2a   : > { %p2168_p11 = por %p2167_p10, %p2166_p9 }
  0x2b   : > { %p2162_p8 = pneg %p2161_p5 }
  0x2c   : > { %1913 = dma.hbm_to_vmem [thread:$0]  (!%p2535_p6), %s3049_s2, 256, %s296_s18, [#allocation7], %s3034_s28, %s3034_s28, %s3035_s29  }
  0x2d   : > { %p2169_p12 = pnand %p2168_p11, %p2162_p8 }
  0x2f   : > { %2172 = shalt.err (!%p2169_p12)
}
  0x30   : > { %s3050_s3 = sld [smem:[#allocation28_spill]]  ;;  %s2184_s18 = scalar_lea.vmem %s2541_s25, 256 }
  0x31   : > { %p2185_p13 = scmp.ne.s32.totalorder %s2541_s25, %s2184_s18  ;;  %p2192_p5 = scmp.lt.s32.totalorder %s2541_s25, %s2541_s25 }
  0x32   : > { %p2193_p8 = scmp.lt.s32.totalorder %s2184_s18, %s2184_s18 }
  0x33   : > { %p2187_p0 = pnand %p2185_p13, %p2545_p7 }
  0x34   : > { %p2194_p9 = por %p2193_p8, %p2192_p5 }
  0x35   : > { %p2188_p2 = pneg %p2187_p0 }
  0x36   : > { %1916 = dma.hbm_to_vmem [thread:$0]  (!%p2535_p6), %s3050_s3, 256, %s2539_s22, [#allocation10], %s3034_s28, %s3034_s28, %s3035_s29  }
  0x37   : > { %p2195_p10 = pnand %p2194_p9, %p2188_p2 }
  0x39   : > { %2198 = shalt.err (!%p2195_p10)
}
  0x3a   : > { %s3051_s5 = sld [smem:[#allocation30_spill]]  ;;  %s2424_s22 = smov [#allocation11]  }
  0x3b   : > { %s321_s30 = sshll.u32 %s2424_s22, 4  ;;  %s2425_s11 = smov [#allocation14]   ;;  %s322_s30 = int_to_ptr.vmem [resolvable:$true] %s321_s30 }
  0x3c   : > { %s350_s12 = sshll.u32 %s2425_s11, 4  ;;  %s2210_s17 = scalar_lea.vmem %s322_s30, 256  ;;  %s351_s12 = int_to_ptr.vmem [resolvable:$true] %s350_s12 }
  0x3d   : > { %p2211_p11 = scmp.ne.s32.totalorder %s322_s30, %s2210_s17  ;;  %p2218_p0 = scmp.lt.s32.totalorder %s322_s30, %s322_s30 }
  0x3e   : > { %p2219_p2 = scmp.lt.s32.totalorder %s2210_s17, %s2210_s17 }
  0x3f   : > { %p2213_p12 = pnand %p2211_p11, %p2545_p7 }
  0x40   : > { %1922 = dma.hbm_to_vmem [thread:$0]  (!%p2535_p6), %s3051_s5, 256, %s2541_s25, [#allocation13], %s3034_s28, %s3034_s28, %s3035_s29  }
  0x41   : > { %p2214_p13 = pneg %p2213_p12  ;;  %p2220_p5 = por %p2219_p2, %p2218_p0 }
  0x43   : > { %p2221_p8 = pnand %p2220_p5, %p2214_p13 }
  0x45   : > { %2224 = shalt.err (!%p2221_p8)
}
  0x46   : > { %s3052_s4 = sld [smem:[#allocation29_spill]]  ;;  %s2236_s18 = scalar_lea.vmem %s351_s12, 128 }
  0x47   : > { %p2237_p9 = scmp.ne.s32.totalorder %s351_s12, %s2236_s18  ;;  %p2244_p12 = scmp.lt.s32.totalorder %s351_s12, %s351_s12 }
  0x48   : > { %p2245_p0 = scmp.lt.s32.totalorder %s2236_s18, %s2236_s18 }
  0x49   : > { %p2239_p10 = pnand %p2237_p9, %p2545_p7 }
  0x4a   : > { %p2246_p13 = por %p2245_p0, %p2244_p12 }
  0x4b   : > { %p2240_p11 = pneg %p2239_p10 }
  0x4c   : > { %1919 = dma.hbm_to_vmem [thread:$0]  (!%p2535_p6), %s3052_s4, 256, %s322_s30, [#allocation10], %s3034_s28, %s3034_s28, %s3035_s29  }
  0x4d   : > { %p2247_p2 = pnand %p2246_p13, %p2240_p11 }
  0x4f   : > { %2250 = shalt.err (!%p2247_p2)
}
  0x50   : > { %s3053_s7 = sld [smem:[#allocation31_spill]]  ;;  %s2426_s22 = smov [#allocation15]  }
  0x51   : > { %s363_s30 = sshll.u32 %s2426_s22, 4  ;;  %s364_s30 = int_to_ptr.vmem [resolvable:$true] %s363_s30 }
  0x52   : > { %s2262_s11 = scalar_lea.vmem %s364_s30, 128  ;;  %p2270_p10 = scmp.lt.s32.totalorder %s364_s30, %s364_s30 }
  0x53   : > { %p2263_p5 = scmp.ne.s32.totalorder %s364_s30, %s2262_s11  ;;  %p2271_p11 = scmp.lt.s32.totalorder %s2262_s11, %s2262_s11 }
  0x55   : > { %p2265_p8 = pnand %p2263_p5, %p2545_p7  ;;  %p2272_p12 = por %p2271_p11, %p2270_p10 }
  0x56   : > { %1925 = dma.hbm_to_vmem [thread:$0]  (!%p2535_p6), %s3053_s7, 128, %s351_s12, [#allocation13], %s3034_s28, %s3034_s28, %s3035_s29  }
  0x57   : > { %p2266_p9 = pneg %p2265_p8 }
  0x59   : > { %p2273_p0 = pnand %p2272_p12, %p2266_p9 }
  0x5b   : > { %2276 = shalt.err (!%p2273_p0)
}
  0x5c   : > { %s3054_s8 = sld [smem:[#allocation32_spill]]  ;;  %s1695_s23 = sadd.s32 4294967294, %s2417_s16  }
  0x5d   : > { %s2621_s26 = sadd.s32 1, %s2417_s16   ;;  %s39_s21 = sadd.s32 1, %s2413_s15 }
  0x5e   : > { %s36_s25 = ssub.s32 %s2417_s16, %s2621_s26  ;;  %p46_p13 = scmp.ne.s32.totalorder %s2413_s15, %s2409_s14 }
  0x5f   : > { %p37_p7 = scmp.eq.s32.totalorder %s36_s25, 0  ;;  %p47_p2 = scmp.eq.s32.totalorder %s2417_s16, 0 }
  0x60   : > { %p52_p5 = scmp.ne.s32.totalorder %s2409_s14, %s2405_s13  ;;  %p270_p9 = scmp.eq.s32.totalorder %s2521_s19, 1 }
  0x61   : > { %s2632_s18 = scalar_select %p37_p7, %s2413_s15, %s39_s21  }
  0x62   : > { %1928 = dma.hbm_to_vmem [thread:$0]  (!%p2535_p6), %s3054_s8, 128, %s364_s30, [#allocation16], %s3034_s28, %s3034_s28, %s3035_s29  }
  0x63   : > { %3055 = sst [smem:[#allocation25_spill]] %s2632_s18  ;;  %p2634_p8 = por %p47_p2, %p46_p13 }
  0x64   : > { %p2640_p6 = por %p3036_p1, %p52_p5  ;;  %p276_p10 = scmp.eq.s32.totalorder %s1695_s23, 1 }
  0x65   : > { %p1946_p11 = scmp.lt.s32.totalorder %s2417_s16, 2  ;;  %s2647_s22 = sand.u32 1, %s2413_s15  }
  0x66   : > { %s3057_s27 = scalar_select %p2640_p6, 1, 0 }
  0x67   : > { %p2649_p12 = por %p270_p9, %p46_p13  ;;  %p2653_p0 = por %p276_p10, %p52_p5 }
  0x68   : > { %s1704_s17 = sshll.u32 %s2647_s22, 3  ;;  %s1749_s12 = sshll.u32 %s2417_s16, 7 }
  0x69   : > { %s3058_s30 = scalar_select %p2649_p12, 1, 0 }
  0x6a   : > { %s3059_s11 = scalar_select %p2653_p0, 1, 0 }
  0x6b   : > { %s3060_s0 = sld [smem:[#allocation26_spill]]  ;;  %s384_s28 = scalar_lea.vmem [#allocation3], %s1704_s17 }
  0x6c   : > { %s391_s29 = sshll.u32 %s384_s28, 4  ;;  %p2668_p7 = pnand %p1946_p11, %p2634_p8  ;;  %s2664_s29 = int_to_ptr.vmem [resolvable:$true] %s391_s29 }
  0x6d   : > { %s381_s5 = scalar_lea.sflag [#allocation4], %s2647_s22 }
  0x6e   : > { %p2279_p2 = pneg %p2668_p7 }
  0x71   : > { %s2662_s23 = scalar_lea.hbm %s3060_s0, %s1749_s12  ;;  %s2282_s24 = scalar_lea.hbm %s3060_s0, 256 }
  0x72   : > { %s2277_s25 = scalar_lea.hbm %s2662_s23, 128  ;;  %p2283_p8 = scmp.lt.s32.totalorder %s2662_s23, %s3060_s0 }
  0x73   : > { %p2278_p13 = scmp.ne.s32.totalorder %s2662_s23, %s2277_s25  ;;  %p2284_p10 = scmp.lt.s32.totalorder %s2282_s24, %s2277_s25 }
  0x75   : > { %p2280_p5 = pnand %p2279_p2, %p2278_p13  ;;  %p2285_p11 = por %p2284_p10, %p2283_p8 }
  0x77   : > { %p2281_p9 = pneg %p2280_p5 }
  0x79   : > { %p2286_p4 = pnand %p2285_p11, %p2281_p9 }
  0x7b   : > { %2289 = shalt.err (!%p2286_p4)
}
  0x7c   : > { %s2290_s3 = scalar_lea.vmem %s2664_s29, 128  ;;  %s2427_s28 = smov [#allocation3]  }
  0x7d   : > { %p2291_p1 = scmp.ne.s32.totalorder %s2664_s29, %s2290_s3  ;;  %s2295_s17 = sshll.u32 %s2427_s28, 4  ;;  %s2296_s17 = int_to_ptr.vmem [resolvable:$false] %s2295_s17 }
  0x7e   : > { %s2297_s4 = scalar_lea.vmem %s2296_s17, 256  ;;  %p2298_p0 = scmp.lt.s32.totalorder %s2664_s29, %s2296_s17 }
  0x7f   : > { %p2293_p13 = pnand %p2291_p1, %p2279_p2  ;;  %p2299_p12 = scmp.lt.s32.totalorder %s2297_s4, %s2290_s3 }
  0x81   : > { %p2294_p5 = pneg %p2293_p13  ;;  %p2300_p6 = por %p2299_p12, %p2298_p0 }
  0x83   : > { %p2301_p8 = pnand %p2300_p6, %p2294_p5 }
  0x85   : > { %2304 = shalt.err (!%p2301_p8)
}
  0x86   : > { %s3062_s25 = smov 4   ;;  %s3063_s24 = smov 64  }
  0x87   : > { %1932 = dma.hbm_to_vmem [thread:$0]  (!%p2668_p7), %s2662_s23, 128, %s2664_s29, %s381_s5, %s3063_s24, %s3063_s24, %s3062_s25  }
  0x88   : > { %s1750_s12 = sshll.u32 %s2417_s16, 6  ;;  %s3064_s28 = sshll.u32 %s2647_s22, 2 }
  0x89   : > { %s2708_s4 = scalar_lea.hbm %s3024_s1, %s1750_s12  ;;  %s405_s17 = scalar_lea.vmem [#allocation6], %s3064_s28 }
  0x8a   : > { %s412_s0 = sshll.u32 %s405_s17, 4  ;;  %s3065_s7 = sand.u32 1, %s2417_s16   ;;  %s2712_s0 = int_to_ptr.vmem [resolvable:$true] %s412_s0 }
  0x8b   : > { %s2716_s8 = scalar_lea.sflag [#allocation7], %s3065_s7  ;;  %s2305_s18 = scalar_lea.hbm %s2708_s4, 64 }
  0x8c   : > { %p2306_p1 = scmp.ne.s32.totalorder %s2708_s4, %s2305_s18  ;;  %s2310_s22 = scalar_lea.hbm %s3024_s1, 128 }
  0x8d   : > { %p2311_p12 = scmp.lt.s32.totalorder %s2708_s4, %s3024_s1  ;;  %p2312_p0 = scmp.lt.s32.totalorder %s2310_s22, %s2305_s18 }
  0x8e   : > { %p2308_p4 = pnand %p2306_p1, %p2279_p2 }
  0x8f   : > { %p2313_p9 = por %p2312_p0, %p2311_p12 }
  0x90   : > { %p2309_p6 = pneg %p2308_p4 }
  0x92   : > { %p2314_p10 = pnand %p2313_p9, %p2309_p6 }
  0x94   : > { %2317 = shalt.err (!%p2314_p10)
}
  0x95   : > { %s2318_s7 = scalar_lea.vmem %s2712_s0, 64  ;;  %s2428_s24 = smov [#allocation6]  }
  0x96   : > { %p2319_p11 = scmp.ne.s32.totalorder %s2712_s0, %s2318_s7  ;;  %s2323_s12 = sshll.u32 %s2428_s24, 4  ;;  %s2324_s12 = int_to_ptr.vmem [resolvable:$false] %s2323_s12 }
  0x97   : > { %s2325_s21 = scalar_lea.vmem %s2324_s12, 128  ;;  %p2326_p8 = scmp.lt.s32.totalorder %s2712_s0, %s2324_s12 }
  0x98   : > { %p2321_p13 = pnand %p2319_p11, %p2279_p2  ;;  %p2327_p1 = scmp.lt.s32.totalorder %s2325_s21, %s2318_s7 }
  0x9a   : > { %p2322_p5 = pneg %p2321_p13  ;;  %p2328_p4 = por %p2327_p1, %p2326_p8 }
  0x9c   : > { %p2329_p12 = pnand %p2328_p4, %p2322_p5 }
  0x9e   : > { %2332 = shalt.err (!%p2329_p12)
}
  0x9f   : > { %s2429_s18 = smov 32   ;;  %s2430_s3 = smov 2  }
  0xa0   : > { %1935 = dma.hbm_to_vmem [thread:$0]  (!%p2668_p7), %s2708_s4, 64, %s2712_s0, %s2716_s8, %s2429_s18, %s2429_s18, %s2430_s3  }
  0xa1   : > { %424 = sbr.rel (%p2526_p3) target bundleno = 1779 (0x6f3), region = 60  ;;  %s2744_s28 = sand.u32 (!%p2526_p3), 1, %s2409_s14  }
  0xa2   : > { %s1711_s17 = sshll.u32 (!%p2526_p3), %s2744_s28, 3  ;;  %s427_s5 = scalar_lea.sflag (!%p2526_p3), [#allocation4], %s2744_s28 }
  0xa3   : > { %s430_s29 = scalar_lea.vmem (!%p2526_p3), [#allocation3], %s1711_s17  ;;  %p3066_p2 = scmp.ne.s32.totalorder (!%p2526_p3), %s3057_s27, 0 }
  0xa6   : > { %2376 = dma.done.wait (%p3066_p2), %s427_s5, 128  }
  0xa7   : > { %2378 = vsyncadd (%p3066_p2), %s427_s5, 4294967168  ;;  %s435_s0 = sand.u32 1, %s2521_s19   ;;  %s1712_s2 = sshll.u32 %s2744_s28, 2 }
  0xa8   : > { %s436_s8 = scalar_lea.sflag [#allocation7], %s435_s0  ;;  %s2754_s20 = scalar_lea.vmem [#allocation6], %s1712_s2 }
  0xa9   : > { %2380 = dma.done.wait (%p3066_p2), %s436_s8, 64  }
  0xaa   : > { %2382 = vsyncadd (%p3066_p2), %s436_s8, 4294967232  ;;  %p3067_p3 = scmp.eq.s32.totalorder %s2521_s19, 0 }
  0xac   : > { %2384 = dma.done.wait (%p3067_p3), [#allocation7], 256   ;;  %p3068_p7 = pmov %p3067_p3 }
  0xad   : > { %p3069_p6 = pmov %p3067_p3 }
  0xae   : > { %2386 = vsyncadd (%p3068_p7), [#allocation7], 4294967040 }
  0xaf   : > { %2388 = dma.done.wait (%p3069_p6), [#allocation10], 512   ;;  %p3070_p0 = pmov %p3067_p3 }
  0xb1   : > { %2390 = vsyncadd (%p3070_p0), [#allocation10], 4294966784  ;;  %p3071_p9 = pmov %p3070_p0 }
  0xb2   : > { %p3072_p10 = pmov %p3070_p0 }
  0xb3   : > { %2392 = dma.done.wait (%p3071_p9), [#allocation13], 384  }
  0xb4   : > { %2394 = vsyncadd (%p3072_p10), [#allocation13], 4294966912  ;;  %p3073_p11 = pmov %p3070_p0 }
  0xb5   : > { %p3074_p13 = pmov %p3070_p0 }
  0xb6   : > { %2396 = dma.done.wait (%p3073_p11), [#allocation16], 128  }
  0xb7   : > { %2398 = vsyncadd (%p3074_p13), [#allocation16], 4294967168  ;;  %v2431_v0 = vmov 0.0   ;;  %vm2432_vm0 = vmmov 0   ;;  %v2079_v1 = vld [vmem:[#allocation8 + $0x8] sm:$0xff]   ;;  %v2080_v2 = vld [vmem:[#allocation8] sm:$0xff]  }
  0xb8   : > { %1800 = vmatprep.subr.bf16.mxu0 %v2431_v0  ;;  %1804 = vmatprep.mubr.msk.bf16.mxu0 %vm2432_vm0, %v2431_v0  ;;  %v2783_v3 = vld [vmem:[%s430_s29] sm:$0xff]   ;;  %v2082_v4 = vld [vmem:[#allocation9 + $0x8] sm:$0xff]   ;;  %vm537_vm1 = vcmask 261120   ;;  %v1765_v6 = vld [vmem:[%s3032_s9] sm:$0xff]   ;;  %s2433_s25 = smov 16   ;;  %s2434_s7 = smov 112  }
  0xb9   : > { %1808 = vmatprep.subr.bf16.mxu1 %v2431_v0  ;;  %1812 = vmatprep.mubr.msk.bf16.mxu1 %vm2432_vm0, %v2431_v0  ;;  %v2083_v5 = vld [vmem:[#allocation9] sm:$0xff]   ;;  %v1757_v7 = vld [vmem:[#allocation14] sm:$0xff]   ;;  %v1767_v9 = vunpack.c.h.bf16 %v1765_v6  ;;  %v1766_v16 = vunpack.c.l.bf16 %v1765_v6  ;;  %v2810_v19 = vld [vmem:[#allocation15] sm:$0xff]   ;;  %s2435_s24 = smov 116   ;;  %s2436_s12 = smov 120   ;;  %vm841_vm2 = vcmask 31744  }
  0xba   : > { %1801 = vmatpush3.bf16.msra.mxu0 %v2079_v1  ;;  %1809 = vmatpush3.bf16.msra.mxu1 %v2082_v4  ;;  %v2791_v8 = vld [vmem:[%s3029_s6] sm:$0xff]   ;;  %v1758_v10 = vunpack.c.l.bf16 %v1757_v7  ;;  %v1759_v11 = vunpack.c.h.bf16 %v1757_v7  ;;  %v1762_v23 = vunpack.c.l.bf16 %v2810_v19  ;;  %v1763_v24 = vunpack.c.h.bf16 %v2810_v19  ;;  %s2437_s21 = smov 4   ;;  %s2438_s18 = smov 124  }
  0xbb   : > { %1802 = vmatprep.subr.bf16.mxu0 %v2431_v0  ;;  %1810 = vmatprep.subr.bf16.mxu1 %v2431_v0  ;;  %v1754_v12 = vunpack.c.l.bf16 %v2791_v8  ;;  %v1755_v13 = vunpack.c.h.bf16 %v2791_v8  ;;  %s2439_s3 = smov 8   ;;  %s2440_s17 = smov 12   ;;  %vm844_vm3 = vcmask 64512   ;;  %vm847_vm4 = vcmask 97280  }
  0xbc   : > { %763 = vrot.lane.b32.xlu1 %v1767_v9, %s2433_s25  ;;  %v2009_v14 = vpack.i.bf16 %v1759_v11, %v1758_v10  ;;  %v2019_v32 = vpack.i.bf16 %v1763_v24, %v1762_v23  ;;  %vm850_vm5 = vcmask 130048   ;;  %vm853_vm6 = vcmask 162816   ;;  %s2441_s5 = smov 104   ;;  %s2442_s29 = smov 24  }
  0xbd   : > { %v2014_v15 = vpack.i.bf16 %v1755_v13, %v1754_v12  ;;  %vm856_vm7 = vcmask 195584   ;;  %vm859_vm8 = vcmask 228352   ;;  %vm954_vm9 = vcmask 1043456   ;;  %s1719_s0 = sshll.u32 %s2744_s28, 4  ;;  %s1529_s23 = scalar_lea.sflag [#allocation5], %s2744_s28 }
  0xbe   : > { %1803 = vmatpush3.bf16.msra.mxu0 %v2080_v2  ;;  %1811 = vmatpush3.bf16.msra.mxu1 %v2083_v5  ;;  %vm1456_vm12 = vcmask 257024   ;;  %s504_s2 = scalar_lea.vmem [#allocation17], %s1719_s0  ;;  %p3075_p8 = scmp.ne.s32.totalorder %s3058_s30, 0 }
  0xbf   : > { %1816 = vmatprep.subr.bf16.mxu0 %v2431_v0  ;;  %2010 = vrot.lane.b32.xlu0 %v2009_v14, %s2433_s25  ;;  %s1542_s8 = sshll.u32 %s504_s2, 4  ;;  %s2973_s8 = int_to_ptr.vmem [resolvable:$true] %s1542_s8 }
  0xc0   : > { %1824 = vmatprep.subr.bf16.mxu1 %v2431_v0  ;;  %2015 = vrot.lane.b32.xlu1 %v2014_v15, %s2433_s25 }
  0xc1   : > { %1805 = vmatmul.mubr.msk.bf16.vlgmr.msra.gmra.mxu0 %vm537_vm1, %v2783_v3  ;;  %1813 = vmatmul.mubr.msk.bf16.vlgmr.msra.gmra.mxu1 %vm537_vm1, %v2783_v3 }
  0xc2   : > { %1820 = vmatprep.mubr.msk.bf16.mxu0 %vm2432_vm0, %v2431_v0  ;;  %1826 = vmatprep.mubr.msk.bf16.mxu1 %vm2432_vm0, %v2431_v0 }
  0xc3   : > { %761 = vrot.lane.b32.xlu0 %v1766_v16, %s2433_s25 }
 0x12e   : > { %v764_v39 = vpop.permute.xlu1 %763 }
 0x131   : > { %v2011_v17 = vpop.permute.xlu0 %2010 }
 0x132   : > { %v2012_v20 = vunpack.i.l.bf16 %v2011_v17  ;;  %v2013_v27 = vunpack.i.h.bf16 %v2011_v17  ;;  %v2016_v42 = vpop.permute.xlu1 %2015 }
 0x133   : > { %v2018_v43 = vunpack.i.h.bf16 %v2016_v42  ;;  %v2017_v44 = vunpack.i.l.bf16 %v2016_v42 }
 0x135   : > { %v762_v34 = vpop.permute.xlu0 %761 }
 0x181   : > { %v575_v18 = vpop.f32.mrf.mxu0  ;;  %v2815_v25 = vpop.f32.mrf.mxu1 }
 0x182   : > { %v745_v21 = vmul.f32 %v1758_v10, %v575_v18  ;;  %v723_v28 = vmul.f32 %v2012_v20, %v575_v18  ;;  %v767_v37 = vmul.f32 %v762_v34, %v2815_v25  ;;  %v789_v38 = vmul.f32 %v1766_v16, %v2815_v25 }
 0x183   : > { %v1806_v22 = vpop.f32.mrf.mxu0  ;;  %v1814_v30 = vpop.f32.mrf.mxu1  ;;  %v743_v46 = vmul.f32 %v2017_v44, %v575_v18  ;;  %v713_v52 = vmul.f32 %v1754_v12, %v575_v18 }
 0x184   : > { %749 = vrot.lane.b32.xlu0 %v745_v21, %s2433_s25 }
 0x185   : > { %v578_v26 = vpop.f32.mrf.mxu0  ;;  %v635_v33 = vpop.f32.mrf.mxu1 }
 0x186   : > { %v746_v29 = vmul.f32 %v1759_v11, %v578_v26  ;;  %v724_v35 = vmul.f32 %v2013_v27, %v578_v26  ;;  %v768_v40 = vmul.f32 %v764_v39, %v635_v33  ;;  %v790_v41 = vmul.f32 %v1767_v9, %v635_v33 }
 0x187   : > { %v1807_v31 = vpop.f32.mrf.mxu0  ;;  %v1815_v36 = vpop.f32.mrf.mxu1  ;;  %v744_v47 = vmul.f32 %v2018_v43, %v578_v26  ;;  %v714_v53 = vmul.f32 %v1755_v13, %v578_v26  ;;  %v758_v7 = vmul.f32 %v1763_v24, %v635_v33  ;;  %v757_v9 = vmul.f32 %v1762_v23, %v2815_v25 }
 0x188   : > { %727 = vrot.lane.b32.xlu0 %v723_v28, %s2434_s7  ;;  %751 = vrot.lane.b32.xlu1 %v746_v29, %s2433_s25 }
 0x18c   : > { %2020 = vrot.lane.b32.xlu0 %v2019_v32, %s2433_s25  ;;  %729 = vrot.lane.b32.xlu1 %v724_v35, %s2434_s7 }
 0x190   : > { %771 = vrot.lane.b32.xlu0 %v767_v37, %s2434_s7  ;;  %793 = vrot.lane.b32.xlu1 %v789_v38, %s2433_s25 }
 0x194   : > { %773 = vrot.lane.b32.xlu0 %v768_v40, %s2434_s7  ;;  %795 = vrot.lane.b32.xlu1 %v790_v41, %s2433_s25 }
 0x1f6   : > { %v750_v45 = vpop.permute.xlu0 %749 }
 0x1f7   : > { %v2829_v50 = vadd.f32 %v750_v45, %v743_v46 }
 0x1fa   : > { %v728_v48 = vpop.permute.xlu0 %727  ;;  %v752_v49 = vpop.permute.xlu1 %751 }
 0x1fb   : > { %v2831_v51 = vadd.f32 %v752_v49, %v744_v47  ;;  %v733_v57 = vsub.f32 %v713_v52, %v728_v48 }
 0x1fd   : > { %v2024_v54 = vpack.i.bf16 %v2831_v51, %v2829_v50 }
 0x1fe   : > { %v2021_v55 = vpop.permute.xlu0 %2020  ;;  %v730_v56 = vpop.permute.xlu1 %729 }
 0x1ff   : > { %v2022_v58 = vunpack.i.l.bf16 %v2021_v55  ;;  %v734_v59 = vsub.f32 %v714_v53, %v730_v56  ;;  %2025 = vrot.lane.b32.xlu1 %v2024_v54, %s2435_s24  ;;  %v2023_v60 = vunpack.i.h.bf16 %v2021_v55 }
 0x201   : > { %v2029_v61 = vpack.i.bf16 %v734_v59, %v733_v57  ;;  %v787_v1 = vmul.f32 %v2022_v58, %v2815_v25  ;;  %v788_v2 = vmul.f32 %v2023_v60, %v635_v33 }
 0x202   : > { %v772_v62 = vpop.permute.xlu0 %771  ;;  %v794_v63 = vpop.permute.xlu1 %793 }
 0x203   : > { %2035 = vrot.lane.b32.xlu1 %v2024_v54, %s2436_s12  ;;  %2030 = vrot.lane.b32.xlu0 %v2029_v61, %s2437_s21  ;;  %v2837_v6 = vadd.f32 %v794_v63, %v787_v1  ;;  %v2849_v12 = vsub.f32 %v757_v9, %v772_v62 }
 0x206   : > { %v774_v4 = vpop.permute.xlu0 %773  ;;  %v796_v5 = vpop.permute.xlu1 %795 }
 0x207   : > { %v2839_v8 = vadd.f32 %v796_v5, %v788_v2  ;;  %2045 = vrot.lane.b32.xlu1 %v2024_v54, %s2438_s18  ;;  %2040 = vrot.lane.b32.xlu0 %v2029_v61, %s2439_s3  ;;  %v2845_v10 = vsub.f32 %v758_v7, %v774_v4 }
 0x209   : > { %v2054_v11 = vpack.i.bf16 %v2839_v8, %v2837_v6  ;;  %v2059_v13 = vpack.i.bf16 %v2845_v10, %v2849_v12 }
 0x20b   : > { %2055 = vrot.lane.b32.xlu1 %v2054_v11, %s2435_s24  ;;  %2050 = vrot.lane.b32.xlu0 %v2029_v61, %s2440_s17 }
 0x20f   : > { %2065 = vrot.lane.b32.xlu1 %v2054_v11, %s2436_s12  ;;  %2060 = vrot.lane.b32.xlu0 %v2059_v13, %s2437_s21 }
 0x213   : > { %2075 = vrot.lane.b32.xlu1 %v2054_v11, %s2438_s18  ;;  %2070 = vrot.lane.b32.xlu0 %v2059_v13, %s2439_s3 }
 0x217   : > { %899 = vrot.lane.b32.xlu1 %v2845_v10, %s2440_s17  ;;  %897 = vrot.lane.b32.xlu0 %v2849_v12, %s2440_s17 }
 0x271   : > { %v2026_v14 = vpop.permute.xlu1 %2025 }
 0x272   : > { %v2028_v15 = vunpack.i.h.bf16 %v2026_v14  ;;  %v2027_v16 = vunpack.i.l.bf16 %v2026_v14 }
 0x274   : > { %v842_v21 = vsel %vm841_vm2, %v733_v57, %v2027_v16  ;;  %v843_v22 = vsel %vm841_vm2, %v734_v59, %v2028_v15 }
 0x275   : > { %v2036_v17 = vpop.permute.xlu1 %2035  ;;  %v2031_v18 = vpop.permute.xlu0 %2030 }
 0x276   : > { %v2033_v19 = vunpack.i.h.bf16 %v2031_v18  ;;  %v2032_v20 = vunpack.i.l.bf16 %v2031_v18  ;;  %v2038_v23 = vunpack.i.h.bf16 %v2036_v17  ;;  %v2037_v24 = vunpack.i.l.bf16 %v2036_v17  ;;  %v2084_v18 = vld [vmem:[#allocation11 + $0x8] sm:$0xff]  }
 0x277   : > { %1817 = vmatpush3.bf16.msra.mxu0 %v2084_v18 }
 0x278   : > { %v845_v25 = vsel %vm844_vm3, %v842_v21, %v2032_v20  ;;  %v846_v26 = vsel %vm844_vm3, %v843_v22, %v2033_v19  ;;  %1818 = vmatprep.subr.bf16.mxu0 %v2431_v0  ;;  %v2085_v19 = vld [vmem:[#allocation11] sm:$0xff]  }
 0x279   : > { %v2046_v27 = vpop.permute.xlu1 %2045  ;;  %v2041_v28 = vpop.permute.xlu0 %2040  ;;  %v848_v33 = vsel %vm847_vm4, %v845_v25, %v2037_v24  ;;  %v849_v34 = vsel %vm847_vm4, %v846_v26, %v2038_v23 }
 0x27a   : > { %v2043_v29 = vunpack.i.h.bf16 %v2041_v28  ;;  %v2042_v30 = vunpack.i.l.bf16 %v2041_v28  ;;  %v2048_v31 = vunpack.i.h.bf16 %v2046_v27  ;;  %v2047_v32 = vunpack.i.l.bf16 %v2046_v27 }
 0x27b   : > { %1819 = vmatpush3.bf16.msra.mxu0 %v2085_v19 }
 0x27c   : > { %v851_v35 = vsel %vm850_vm5, %v848_v33, %v2042_v30  ;;  %v852_v36 = vsel %vm850_vm5, %v849_v34, %v2043_v29  ;;  %1830 = vmatprep.subr.bf16.mxu0 %v2431_v0 }
 0x27d   : > { %v2051_v37 = vpop.permute.xlu0 %2050  ;;  %v854_v40 = vsel %vm853_vm6, %v851_v35, %v2047_v32  ;;  %v855_v41 = vsel %vm853_vm6, %v852_v36, %v2048_v31  ;;  %v2056_v47 = vpop.permute.xlu1 %2055 }
 0x27e   : > { %v2053_v38 = vunpack.i.h.bf16 %v2051_v37  ;;  %v2052_v39 = vunpack.i.l.bf16 %v2051_v37  ;;  %v2057_v52 = vunpack.i.l.bf16 %v2056_v47  ;;  %v2058_v55 = vunpack.i.h.bf16 %v2056_v47  ;;  %1821 = vmatmul.mubr.msk.bf16.vlgmr.msra.gmra.mxu0 %vm537_vm1, %v2783_v3  ;;  %v1769_v37 = vld [vmem:[%s2754_s20] sm:$0xf]   ;;  %s1751_s20 = sshll.u32 %s2521_s19, 8  ;;  %s2443_s19 = smov [#allocation17]  }
 0x27f   : > { %1832 = vmatprep.mubr.msk.bf16.mxu0 %vm2432_vm0, %v2431_v0  ;;  %s2978_s22 = scalar_lea.hbm %s3033_s10, %s1751_s20 }
 0x280   : > { %v857_v42 = vsel %vm856_vm7, %v854_v40, %v2052_v39  ;;  %v858_v43 = vsel %vm856_vm7, %v855_v41, %v2053_v38  ;;  %v904_v60 = vsel %vm841_vm2, %v2845_v10, %v2058_v55  ;;  %v1770_v38 = vunpack.c.0.s8 %v1769_v37 }
 0x281   : > { %v860_v44 = vsel %vm859_vm8, %v857_v42, %v2829_v50  ;;  %v861_v45 = vsel %vm859_vm8, %v858_v43, %v2831_v51  ;;  %v2061_v48 = vpop.permute.xlu0 %2060  ;;  %v2066_v49 = vpop.permute.xlu1 %2065  ;;  %v903_v50 = vsel %vm841_vm2, %v2849_v12, %v2057_v52  ;;  %v1771_v39 = vunpack.c.1.s8 %v1769_v37 }
 0x282   : > { %v862_v46 = vpack.c.bf16 %v861_v45, %v860_v44  ;;  %v2062_v53 = vunpack.i.l.bf16 %v2061_v48  ;;  %v2067_v56 = vunpack.i.l.bf16 %v2066_v49  ;;  %v2063_v51 = vunpack.i.h.bf16 %v2061_v48 }
 0x283   : > { %v2068_v61 = vunpack.i.h.bf16 %v2066_v49  ;;  %vm512_vm10 = vcmp.eq.s32.totalorder %v1770_v38, 0  ;;  %vm513_vm11 = vcmp.eq.s32.totalorder %v1771_v39, 0 }
 0x284   : > { %1191 = vrot.lane.b32.xlu1 %v862_v46, %s2434_s7  ;;  %1068 = vrot.lane.b32.xlu0 %v862_v46, %s2436_s12  ;;  %v905_v57 = vsel %vm844_vm3, %v903_v50, %v2062_v53  ;;  %v906_v1 = vsel %vm844_vm3, %v904_v60, %v2063_v51  ;;  %v514_v40 = vsel %vm512_vm10, -10000.0, %v2431_v0  ;;  %v515_v44 = vsel %vm513_vm11, -10000.0, %v2431_v0 }
 0x285   : > { %v2071_v54 = vpop.permute.xlu0 %2070  ;;  %v2076_v58 = vpop.permute.xlu1 %2075  ;;  %v907_v63 = vsel %vm847_vm4, %v905_v57, %v2067_v56  ;;  %v908_v7 = vsel %vm847_vm4, %v906_v1, %v2068_v61 }
 0x286   : > { %v2072_v59 = vunpack.i.l.bf16 %v2071_v54  ;;  %v2077_v62 = vunpack.i.l.bf16 %v2076_v58  ;;  %v2073_v2 = vunpack.i.h.bf16 %v2071_v54  ;;  %v2078_v5 = vunpack.i.h.bf16 %v2076_v58 }
 0x288   : > { %1311 = vrot.lane.b32.xlu1 %v862_v46, %s2441_s5  ;;  %v909_v4 = vsel %vm850_vm5, %v907_v63, %v2072_v59  ;;  %v910_v12 = vsel %vm850_vm5, %v908_v7, %v2073_v2 }
 0x289   : > { %v898_v9 = vpop.permute.xlu0 %897  ;;  %v911_v11 = vsel %vm853_vm6, %v909_v4, %v2077_v62  ;;  %v900_v10 = vpop.permute.xlu1 %899  ;;  %v912_v14 = vsel %vm853_vm6, %v910_v12, %v2078_v5 }
 0x28a   : > { %v913_v13 = vsel %vm856_vm7, %v911_v11, %v898_v9  ;;  %v914_v16 = vsel %vm856_vm7, %v912_v14, %v900_v10 }
 0x28b   : > { %v915_v15 = vsel %vm859_vm8, %v913_v13, %v2837_v6  ;;  %v916_v17 = vsel %vm859_vm8, %v914_v16, %v2839_v8 }
 0x2a2   : > { %917 = vxpose.xlu0.b32.start [1/2] (short) (narrow) %v915_v15, 32 }
 0x2a6   : > { %918 = vxpose.xlu0.b32.end [2/2] (short) (narrow) %v916_v17, 32 }
 0x2f6   : > { %v1069_v6 = vpop.permute.xlu0 %1068  ;;  %v1192_v30 = vpop.permute.xlu1 %1191 }
 0x2fa   : > { %v1312_v31 = vpop.permute.xlu1 %1311 }
 0x31e   : > { %v933_v20 = vpop.trf.xlu0 }
 0x322   : > { %v934_v21 = vpop.trf.xlu0 }
 0x323   : > { %v949_v8 = vpack.c.bf16 %v934_v21, %v933_v20 }
 0x325   : > { %v956_v22 = vsel %vm954_vm9, %v949_v8, 0  ;;  %v1071_v23 = vrot.slane %v949_v8, 4 }
 0x326   : > { %1825 = vmatpush3.bf16.msra.mxu1 %v956_v22  ;;  %v935_v24 = vpop.trf.xlu0 }
 0x327   : > { %1836 = vmatprep.subr.bf16.mxu1 %v2431_v0  ;;  %v1076_v25 = vsel %vm954_vm9, %v1071_v23, 0 }
 0x329   : > { %1827 = vmatmul.mubr.msk.bf16.vlgmr.msra.gmra.mxu1 %vm844_vm3, %v862_v46 }
 0x32a   : > { %1837 = vmatpush3.bf16.msra.mxu1 %v1076_v25  ;;  %1838 = vmatprep.mubr.msk.bf16.mxu1 %vm2432_vm0, %v2431_v0  ;;  %v936_v3 = vpop.trf.xlu0 }
 0x32b   : > { %v950_v26 = vpack.c.bf16 %v936_v3, %v935_v24  ;;  %1848 = vmatprep.subr.bf16.mxu1 %v2431_v0 }
 0x32d   : > { %v1197_v27 = vsel %vm954_vm9, %v950_v26, 0  ;;  %v1314_v28 = vrot.slane %v950_v26, 4 }
 0x32f   : > { %v1319_v29 = vsel %vm954_vm9, %v1314_v28, 0 }
 0x331   : > { %1839 = vmatmul.mubr.msk.bf16.vlgmr.msra.gmra.mxu1 %vm844_vm3, %v1069_v6 }
 0x332   : > { %1849 = vmatpush3.bf16.msra.mxu1 %v1197_v27  ;;  %1850 = vmatprep.mubr.msk.bf16.mxu1 %vm2432_vm0, %v2431_v0 }
 0x333   : > { %1860 = vmatprep.subr.bf16.mxu1 %v2431_v0 }
 0x339   : > { %1851 = vmatmul.mubr.msk.bf16.vlgmr.msra.gmra.mxu1 %vm844_vm3, %v1192_v30 }
 0x33a   : > { %1861 = vmatpush3.bf16.msra.mxu1 %v1319_v29  ;;  %1862 = vmatprep.mubr.msk.bf16.mxu1 %vm2432_vm0, %v2431_v0 }
 0x33b   : > { %1872 = vmatprep.subr.bf16.mxu1 %v2431_v0 }
 0x33e   : > { %v689_v32 = vpop.f32.mrf.mxu0 }
 0x340   : > { %v1822_v33 = vpop.f32.mrf.mxu0 }
 0x341   : > { %1863 = vmatmul.mubr.msk.bf16.vlgmr.msra.gmra.mxu1 %vm844_vm3, %v1312_v31 }
 0x342   : > { %1876 = vmatprep.mubr.msk.bf16.mxu1 %vm2432_vm0, %v2431_v0  ;;  %v692_v34 = vpop.f32.mrf.mxu0 }
 0x343   : > { %v696_v36 = vpack.c.bf16 %v692_v34, %v689_v32 }
 0x344   : > { %v1823_v35 = vpop.f32.mrf.mxu0 }
 0x345   : > { %1831 = vmatpush3.bf16.msra.mxu0 %v696_v36 }
 0x346   : > { %1842 = vmatprep.subr.bf16.mxu0 %v2431_v0 }
 0x3e9   : > { %v992_v41 = vpop.f32.mrf.mxu1 }
 0x3ea   : > { %v993_v42 = vadd.f32 %v992_v41, %v514_v40 }
 0x3eb   : > { %v1828_v43 = vpop.f32.mrf.mxu1 }
 0x3ec   : > { %v999_v45 = vsel %vm850_vm5, %v993_v42, -inf }
 0x3ed   : > { %1000 = vmax.xlane.f32.xlu1 %v999_v45  ;;  %v995_v46 = vpop.f32.mrf.mxu1 }
 0x3ee   : > { %v996_v47 = vadd.f32 %v995_v46, %v515_v44 }
 0x3ef   : > { %v1829_v48 = vpop.f32.mrf.mxu1 }
 0x3f0   : > { %v1002_v49 = vsel %vm850_vm5, %v996_v47, -inf }
 0x3f1   : > { %1003 = vmax.xlane.f32.xlu0 %v1002_v49  ;;  %v1112_v52 = vpop.f32.mrf.mxu1 }
 0x3f2   : > { %v1113_v62 = vadd.f32 %v1112_v52, %v514_v40 }
 0x3f3   : > { %v1840_v53 = vpop.f32.mrf.mxu1 }
 0x3f4   : > { %v1119_v1 = vsel %vm850_vm5, %v1113_v62, -inf }
 0x3f5   : > { %v1115_v54 = vpop.f32.mrf.mxu1 }
 0x3f6   : > { %v1116_v63 = vadd.f32 %v1115_v54, %v515_v44 }
 0x3f7   : > { %v1841_v55 = vpop.f32.mrf.mxu1 }
 0x3f8   : > { %v1122_v4 = vsel %vm850_vm5, %v1116_v63, -inf }
 0x3f9   : > { %v1233_v50 = vpop.f32.mrf.mxu1 }
 0x3fa   : > { %v1234_v2 = vadd.f32 %v1233_v50, %v514_v40 }
 0x3fb   : > { %v1852_v56 = vpop.f32.mrf.mxu1 }
 0x3fc   : > { %v1240_v7 = vsel %vm850_vm5, %v1234_v2, -inf }
 0x3fd   : > { %v1236_v51 = vpop.f32.mrf.mxu1 }
 0x3fe   : > { %1139 = vrot.lane.b32.xlu1 %v696_v36, %s2436_s12  ;;  %v1237_v5 = vadd.f32 %v1236_v51, %v515_v44 }
 0x3ff   : > { %v1853_v57 = vpop.f32.mrf.mxu1 }
 0x400   : > { %v1243_v11 = vsel %vm850_vm5, %v1237_v5, -inf }
 0x401   : > { %v1355_v58 = vpop.f32.mrf.mxu1 }
 0x402   : > { %1259 = vrot.lane.b32.xlu1 %v696_v36, %s2434_s7  ;;  %v1356_v9 = vadd.f32 %v1355_v58, %v514_v40  ;;  %s2337_s7 = sshll.u32 %s2443_s19, 4  ;;  %s2338_s7 = int_to_ptr.vmem [resolvable:$false] %s2337_s7 }
 0x403   : > { %v1864_v59 = vpop.f32.mrf.mxu1  ;;  %s2339_s24 = scalar_lea.vmem %s2338_s7, 512  ;;  %p2340_p12 = scmp.lt.s32.totalorder %s2973_s8, %s2338_s7 }
 0x404   : > { %v1362_v13 = vsel %vm850_vm5, %v1356_v9, -inf }
 0x405   : > { %v1358_v60 = vpop.f32.mrf.mxu1 }
 0x406   : > { %v1359_v12 = vadd.f32 %v1358_v60, %v515_v44 }
 0x407   : > { %v1865_v61 = vpop.f32.mrf.mxu1 }
 0x408   : > { %v1365_v10 = vsel %vm850_vm5, %v1359_v12, -inf }
 0x426   : > { %1120 = vmax.xlane.f32.xlu1 %v1119_v1 }
 0x42a   : > { %1123 = vmax.xlane.f32.xlu1 %v1122_v4 }
 0x42e   : > { %1241 = vmax.xlane.f32.xlu1 %v1240_v7 }
 0x432   : > { %1244 = vmax.xlane.f32.xlu1 %v1243_v11 }
 0x436   : > { %1363 = vmax.xlane.f32.xlu1 %v1362_v13 }
 0x43a   : > { %1366 = vmax.xlane.f32.xlu1 %v1365_v10 }
 0x44b   : > { %1381 = vrot.lane.b32.xlu1 %v696_v36, %s2441_s5 }
 0x476   : > { %v1001_v14 = vpop.xlane.xlu1 %1000 }
 0x477   : > { %v1005_v15 = vsub.f32 %v993_v42, %v1001_v14 }
 0x479   : > { %v1007_v16 = vmul.f32 1.442695, %v1005_v15 }
 0x47a   : > { %v1004_v17 = vpop.xlane.xlu0 %1003  ;;  %v1140_v8 = vpop.permute.xlu1 %1139 }
 0x47b   : > { %v1006_v18 = vsub.f32 %v996_v47, %v1004_v17  ;;  %2089 = vpow2.f32 %v1007_v16 }
 0x47d   : > { %v1009_v19 = vmul.f32 1.442695, %v1006_v18 }
 0x47e   : > { %v1260_v22 = vpop.permute.xlu1 %1259 }
 0x47f   : > { %2091 = vpow2.f32 %v1009_v19 }
 0x488   : > { %v2935_v6 = vpop.eup %2089 }
 0x489   : > { %v1011_v51 = vsel %vm850_vm5, %v2935_v6, 0.0 }
 0x48c   : > { %v2937_v20 = vpop.eup %2091 }
 0x48d   : > { %v1017_v21 = vpack.c.bf16 %v2937_v20, %v2935_v6  ;;  %v1014_v57 = vsel %vm850_vm5, %v2937_v20, 0.0 }
 0x48f   : > { %1833 = vmatmul.mubr.msk.bf16.vlgmr.msra.gmra.mxu0 %vm850_vm5, %v1017_v21 }
 0x490   : > { %1843 = vmatpush3.bf16.msra.mxu0 %v1140_v8  ;;  %1844 = vmatprep.mubr.msk.bf16.mxu0 %vm2432_vm0, %v2431_v0 }
 0x491   : > { %1854 = vmatprep.subr.bf16.mxu0 %v2431_v0 }
 0x4af   : > { %v1121_v23 = vpop.xlane.xlu1 %1120 }
 0x4b0   : > { %v1125_v24 = vsub.f32 %v1113_v62, %v1121_v23 }
 0x4b2   : > { %v1127_v25 = vmul.f32 1.442695, %v1125_v24 }
 0x4b3   : > { %v1124_v3 = vpop.xlane.xlu1 %1123 }
 0x4b4   : > { %2093 = vpow2.f32 %v1127_v25  ;;  %v1126_v26 = vsub.f32 %v1116_v63, %v1124_v3 }
 0x4b6   : > { %v1129_v27 = vmul.f32 1.442695, %v1126_v26 }
 0x4b7   : > { %v1242_v28 = vpop.xlane.xlu1 %1241 }
 0x4b8   : > { %2095 = vpow2.f32 %v1129_v27  ;;  %v1246_v29 = vsub.f32 %v1234_v2, %v1242_v28 }
 0x4ba   : > { %v1248_v30 = vmul.f32 1.442695, %v1246_v29 }
 0x4bb   : > { %v1245_v31 = vpop.xlane.xlu1 %1244 }
 0x4bc   : > { %2097 = vpow2.f32 %v1248_v30  ;;  %v1247_v32 = vsub.f32 %v1237_v5, %v1245_v31  ;;  %v2086_v30 = vld [vmem:[#allocation12 + $0x8] sm:$0xff]  }
 0x4bd   : > { %1873 = vmatpush3.bf16.msra.mxu1 %v2086_v30 }
 0x4be   : > { %v1250_v33 = vmul.f32 1.442695, %v1247_v32  ;;  %v2087_v32 = vld [vmem:[#allocation12] sm:$0xff]   ;;  %1874 = vmatprep.subr.bf16.mxu1 %v2431_v0 }
 0x4bf   : > { %v1364_v34 = vpop.xlane.xlu1 %1363 }
 0x4c0   : > { %2099 = vpow2.f32 %v1250_v33  ;;  %v1368_v35 = vsub.f32 %v1356_v9, %v1364_v34 }
 0x4c1   : > { %v2094_v36 = vpop.eup %2093  ;;  %1875 = vmatpush3.bf16.msra.mxu1 %v2087_v32 }
 0x4c2   : > { %v1370_v37 = vmul.f32 1.442695, %v1368_v35  ;;  %v1131_v38 = vsel %vm850_vm5, %v2094_v36, 0.0 }
 0x4c3   : > { %1132 = vadd.xlane.f32.xlu0 %v1131_v38  ;;  %v1367_v39 = vpop.xlane.xlu1 %1366 }
 0x4c4   : > { %2101 = vpow2.f32 %v1370_v37  ;;  %v1369_v40 = vsub.f32 %v1359_v12, %v1367_v39 }
 0x4c5   : > { %v2096_v41 = vpop.eup %2095 }
 0x4c6   : > { %v1372_v42 = vmul.f32 1.442695, %v1369_v40  ;;  %v1134_v43 = vsel %vm850_vm5, %v2096_v41, 0.0  ;;  %v1137_v44 = vpack.c.bf16 %v2096_v41, %v2094_v36 }
 0x4c7   : > { %1135 = vadd.xlane.f32.xlu1 %v1134_v43  ;;  %v1382_v52 = vpop.permute.xlu1 %1381 }
 0x4c8   : > { %2103 = vpow2.f32 %v1372_v42  ;;  %1845 = vmatmul.mubr.msk.bf16.vlgmr.msra.gmra.mxu0 %vm850_vm5, %v1137_v44 }
 0x4c9   : > { %v2098_v45 = vpop.eup %2097  ;;  %1855 = vmatpush3.bf16.msra.mxu0 %v1260_v22  ;;  %1856 = vmatprep.mubr.msk.bf16.mxu0 %vm2432_vm0, %v2431_v0 }
 0x4ca   : > { %v1252_v46 = vsel %vm850_vm5, %v2098_v45, 0.0  ;;  %1866 = vmatprep.subr.bf16.mxu0 %v2431_v0 }
 0x4cb   : > { %1253 = vadd.xlane.f32.xlu0 %v1252_v46 }
 0x4cd   : > { %v2100_v47 = vpop.eup %2099 }
 0x4ce   : > { %v1255_v48 = vsel %vm850_vm5, %v2100_v47, 0.0  ;;  %v1258_v49 = vpack.c.bf16 %v2100_v47, %v2098_v45 }
 0x4cf   : > { %1256 = vadd.xlane.f32.xlu0 %v1255_v48 }
 0x4d0   : > { %1857 = vmatmul.mubr.msk.bf16.vlgmr.msra.gmra.mxu0 %vm850_vm5, %v1258_v49 }
 0x4d1   : > { %v2102_v53 = vpop.eup %2101  ;;  %1867 = vmatpush3.bf16.msra.mxu0 %v1382_v52  ;;  %1868 = vmatprep.mubr.msk.bf16.mxu0 %vm2432_vm0, %v2431_v0 }
 0x4d2   : > { %v1374_v54 = vsel %vm850_vm5, %v2102_v53, 0.0 }
 0x4d3   : > { %1375 = vadd.xlane.f32.xlu0 %v1374_v54 }
 0x4d5   : > { %v2104_v55 = vpop.eup %2103 }
 0x4d6   : > { %v1377_v50 = vsel %vm850_vm5, %v2104_v55, 0.0  ;;  %v1380_v56 = vpack.c.bf16 %v2104_v55, %v2102_v53 }
 0x4d7   : > { %1378 = vadd.xlane.f32.xlu0 %v1377_v50 }
 0x4d8   : > { %1869 = vmatmul.mubr.msk.bf16.vlgmr.msra.gmra.mxu0 %vm850_vm5, %v1380_v56 }
 0x4db   : > { %1012 = vadd.xlane.f32.xlu0 %v1011_v51 }
 0x4df   : > { %1015 = vadd.xlane.f32.xlu0 %v1014_v57 }
 0x54c   : > { %v1133_v59 = vpop.xlane.xlu0 %1132 }
 0x54f   : > { %v1055_v58 = vpop.f32.mrf.mxu0 }
 0x550   : > { %v1136_v14 = vpop.xlane.xlu1 %1135 }
 0x551   : > { %v1834_v60 = vpop.f32.mrf.mxu0 }
 0x553   : > { %v1058_v61 = vpop.f32.mrf.mxu0 }
 0x554   : > { %v1254_v62 = vpop.xlane.xlu0 %1253 }
 0x555   : > { %v1835_v63 = vpop.f32.mrf.mxu0 }
 0x558   : > { %v1257_v1 = vpop.xlane.xlu0 %1256 }
 0x55c   : > { %v1376_v2 = vpop.xlane.xlu0 %1375 }
 0x560   : > { %v1379_v4 = vpop.xlane.xlu0 %1378 }
 0x564   : > { %v1013_v5 = vpop.xlane.xlu0 %1012 }
 0x565   : > { %2105 = vrcp.f32 %v1013_v5 }
 0x568   : > { %v1016_v7 = vpop.xlane.xlu0 %1015 }
 0x569   : > { %2107 = vrcp.f32 %v1016_v7 }
 0x56a   : > { %2109 = vrcp.f32 %v1133_v59 }
 0x56b   : > { %2111 = vrcp.f32 %v1136_v14 }
 0x56c   : > { %2113 = vrcp.f32 %v1254_v62 }
 0x56d   : > { %2115 = vrcp.f32 %v1257_v1 }
 0x56e   : > { %2117 = vrcp.f32 %v1376_v2 }
 0x56f   : > { %2119 = vrcp.f32 %v1379_v4 }
 0x572   : > { %v2106_v9 = vpop.eup %2105 }
 0x573   : > { %v1064_v12 = vmul.f32 %v2106_v9, %v1055_v58 }
 0x576   : > { %v2108_v11 = vpop.eup %2107 }
 0x577   : > { %v1065_v13 = vmul.f32 %v2108_v11, %v1058_v61  ;;  %v2110_v17 = vpop.eup %2109 }
 0x578   : > { %v2112_v18 = vpop.eup %2111 }
 0x579   : > { %v1066_v10 = vpack.c.bf16 %v1065_v13, %v1064_v12  ;;  %v2114_v24 = vpop.eup %2113 }
 0x57a   : > { %v2116_v25 = vpop.eup %2115 }
 0x57b   : > { %v2118_v34 = vpop.eup %2117 }
 0x57c   : > { %v2120_v35 = vpop.eup %2119 }
 0x588   : > { %v1179_v15 = vpop.f32.mrf.mxu0 }
 0x589   : > { %v1188_v6 = vmul.f32 %v2110_v17, %v1179_v15 }
 0x58a   : > { %v1846_v16 = vpop.f32.mrf.mxu0 }
 0x58c   : > { %v1182_v19 = vpop.f32.mrf.mxu0 }
 0x58d   : > { %v1189_v20 = vmul.f32 %v2112_v18, %v1182_v19 }
 0x58e   : > { %v1847_v21 = vpop.f32.mrf.mxu0 }
 0x58f   : > { %v1190_v8 = vpack.c.bf16 %v1189_v20, %v1188_v6 }
 0x590   : > { %v1299_v22 = vpop.f32.mrf.mxu0 }
 0x591   : > { %1434 = vrot.lane.b32.xlu0 %v1190_v8, %s2439_s3  ;;  %v1308_v26 = vmul.f32 %v2114_v24, %v1299_v22 }
 0x592   : > { %v1858_v23 = vpop.f32.mrf.mxu0 }
 0x594   : > { %v1302_v3 = vpop.f32.mrf.mxu0 }
 0x595   : > { %v1309_v27 = vmul.f32 %v2116_v25, %v1302_v3 }
 0x596   : > { %v1859_v28 = vpop.f32.mrf.mxu0 }
 0x597   : > { %v1310_v29 = vpack.c.bf16 %v1309_v27, %v1308_v26 }
 0x598   : > { %v1421_v31 = vpop.f32.mrf.mxu0 }
 0x599   : > { %1437 = vrot.lane.b32.xlu1 %v1310_v29, %s2433_s25  ;;  %v1430_v37 = vmul.f32 %v2118_v34, %v1421_v31  ;;  %s2333_s25 = scalar_lea.vmem %s2973_s8, 256 }
 0x59a   : > { %v1870_v33 = vpop.f32.mrf.mxu0  ;;  %p2334_p5 = scmp.ne.s32.totalorder %s2973_s8, %s2333_s25  ;;  %p2341_p2 = scmp.lt.s32.totalorder %s2339_s24, %s2333_s25 }
 0x59c   : > { %v1424_v36 = vpop.f32.mrf.mxu0  ;;  %p2335_p1 = pnand %p2334_p5, %p3075_p8  ;;  %p2342_p3 = por %p2341_p2, %p2340_p12 }
 0x59d   : > { %v1431_v38 = vmul.f32 %v2120_v35, %v1424_v36 }
 0x59e   : > { %v1871_v39 = vpop.f32.mrf.mxu0  ;;  %p2336_p4 = pneg %p2335_p1 }
 0x59f   : > { %v1432_v40 = vpack.c.bf16 %v1431_v38, %v1430_v37 }
 0x5a0   : > { %p2343_p7 = pnand %p2342_p3, %p2336_p4 }
 0x5a1   : > { %1440 = vrot.lane.b32.xlu0 %v1432_v40, %s2442_s29 }
 0x603   : > { %v1435_v41 = vpop.permute.xlu0 %1434 }
 0x604   : > { %v1444_v43 = vsel %vm844_vm3, %v1066_v10, %v1435_v41 }
 0x60b   : > { %v1438_v42 = vpop.permute.xlu1 %1437 }
 0x60c   : > { %v1446_v44 = vsel %vm850_vm5, %v1444_v43, %v1438_v42 }
 0x613   : > { %v1441_v45 = vpop.permute.xlu0 %1440 }
 0x614   : > { %v1448_v0 = vsel %vm856_vm7, %v1446_v44, %v1441_v45 }
 0x615   : > { %v1738_v46 = vcombine.low %v1448_v0, %v1448_v0  ;;  %v1739_v47 = vcombine.high %v1448_v0, %v1448_v0 }
 0x617   : > { %1457 = vst.msk [vmem:[#allocation2] sm:$0xf] %vm1456_vm12, %v1738_v46  ;;  %1458 = vst.msk [vmem:[#allocation2 + $0x4] sm:$0xf] %vm1456_vm12, %v1739_v47 }
 0x61e   : > { %v2088_v48 = vld [vmem:[#allocation2] sm:$0xff]  }
 0x61f   : > { %1877 = vmatmul.mubr.msk.bf16.vlgmr.msra.gmra.mxu1 %vm537_vm1, %v2088_v48 }
 0x6df   : > { %v1519_v49 = vpop.f32.mrf.mxu1 }
 0x6e0   : > { %1526 = vst.msk [vmem:[%s504_s2] sm:$0xff] %vm537_vm1, %v1519_v49 }
 0x6e1   : > { %v1878_v52 = vpop.f32.mrf.mxu1 }
 0x6e3   : > { %v1522_v53 = vpop.f32.mrf.mxu1 }
 0x6e4   : > { %1527 = vst.msk [vmem:[%s504_s2 + $0x8] sm:$0xff] %vm537_vm1, %v1522_v53 }
 0x6e5   : > { %v1879_v54 = vpop.f32.mrf.mxu1 }
 0x6e6   : > { %2346 = shalt.err (!%p2343_p7)
}
 0x6e7   : > { %s2347_s12 = scalar_lea.hbm %s2978_s22, 256  ;;  %s2351_s17 = scalar_lea.hbm %s3033_s10, 512 }
 0x6e8   : > { %p2348_p6 = scmp.ne.s32.totalorder %s2978_s22, %s2347_s12  ;;  %p2352_p10 = scmp.lt.s32.totalorder %s2978_s22, %s3033_s10 }
 0x6e9   : > { %p2353_p11 = scmp.lt.s32.totalorder %s2351_s17, %s2347_s12 }
 0x6ea   : > { %p2349_p0 = pnand %p2348_p6, %p3075_p8 }
 0x6eb   : > { %p2354_p13 = por %p2353_p11, %p2352_p10 }
 0x6ec   : > { %p2350_p9 = pneg %p2349_p0 }
 0x6ee   : > { %p2355_p5 = pnand %p2354_p13, %p2350_p9 }
 0x6f0   : > { %2358 = shalt.err (!%p2355_p5)
}
 0x6f1   : > { %s2444_s0 = smov 128  }
 0x6f2   : > { %1908 = dma.vmem_to_hbm [thread:$0]  (%p3075_p8), %s2973_s8, 256, %s2978_s22, %s1529_s23, %s2444_s0, %s2444_s0, %s2439_s3  }
 0x6f3 PF: > { %s1557_s2 = sand.u32 1, %s2405_s13   ;;  %p3076_p1 = scmp.ne.s32.totalorder %s3059_s11, 0 }
 0x6f4   : > { %p3077_p4 = scmp.ge.s32.totalorder %s2417_s16, 2  ;;  %s1558_s20 = scalar_lea.sflag [#allocation5], %s1557_s2 }
 0x6f6   : > { %p1937_p12 = pnand %p3077_p4, %p3076_p1 }
 0x6f8   : > { %p1938_p2 = pneg %p1937_p12 }
 0x6fa   : > { %2400 = dma.done.wait (%p1938_p2), %s1558_s20, 256  }
 0x6fb   : > { %2402 = vsyncadd (%p1938_p2), %s1558_s20, 4294967040  ;;  %s3078_s30 = sld [smem:[#allocation25_spill]]  ;;  %p29_p3 = scmp.ge.s32.totalorder %s2621_s26, 4  }
 0x6fc   : > { %s3079_s13 = smov %s2409_s14  ;;  %s3080_s14 = smov %s2413_s15 }
 0x6fd   : > { %s3082_s16 = smov %s2621_s26  ;;  %31 = sbr.rel (!%p29_p3) target bundleno = 18 (0x12), region = 142 }
 0x701   : > { %s3081_s15 = smov %s3078_s30 }
 0x702   :  { %1563 = vsyncpa [#allocation4], 1 }
 0x703   :  { %1565 = vsyncpa [#allocation4 + $0x1], 1 }
 0x704   :  { %1566 = vsyncpa [#allocation7], 1 }
 0x705   :  { %1568 = vsyncpa [#allocation7 + $0x1], 1 }
 0x706   :  { %1569 = vsyncpa [#allocation10], 1 }
 0x707   :  { %1570 = vsyncpa [#allocation13], 1 }
 0x708   :  { %1571 = vsyncpa [#allocation16], 1 }
 0x709   :  { %1572 = vsyncpa [#allocation5], 1 }
 0x70a   :  { %1574 = vsyncpa [#allocation5 + $0x1], 1 }

</bundles_post_ra>
